<compile_context>
chip_gen: v7x
topology: tpu7x:2x2x1
jax: 0.10.0
libtpu: 0.0.40
codegen_flags: <defaults>
</compile_context>

<pallas_src>
import functools
import math

import jax
import jax.numpy as jnp
from jax.experimental import pallas as pl
from jax.experimental.pallas import tpu as pltpu

_L2_EPS = 1e-12  # torch F.normalize default eps


def _mh_xcit_attention_kernel(
    x_ref, wqkv_ref, bqkv_ref, wo_ref, bo_ref, tau_ref, out_ref, *, num_heads
):
    N, E = x_ref.shape[1], x_ref.shape[2]
    hd = E // num_heads

    x = x_ref[0]                                    # (N, E) f32
    xb = x.astype(jnp.bfloat16)

    # ---- fused Q/K/V projection: one (N,E) x (E,3E) bf16 matmul, f32 accum ----
    qkv = jnp.dot(xb, wqkv_ref[...], preferred_element_type=jnp.float32)
    qkv = qkv + bqkv_ref[...]                       # (N, 3E) f32
    q = qkv[:, 0 * E:1 * E]
    k = qkv[:, 1 * E:2 * E]
    v = qkv[:, 2 * E:3 * E]

    inv_tau = pl.reciprocal(tau_ref[...], approx=True)   # (1, hd)

    acc = jnp.zeros((N, E), jnp.float32)
    for h in range(num_heads):
        lo = h * hd
        qh = q[:, lo:lo + hd]
        kh = k[:, lo:lo + hd]
        vh = v[:, lo:lo + hd]

        # L2-normalize over the token axis (torch F.normalize(..., p=2, dim=1)),
        # statistics in f32.
        q_norm = jnp.maximum(jnp.sqrt(jnp.sum(qh * qh, axis=0, keepdims=True)), _L2_EPS)
        k_norm = jnp.maximum(jnp.sqrt(jnp.sum(kh * kh, axis=0, keepdims=True)), _L2_EPS)
        qh = qh * pl.reciprocal(q_norm, approx=True)
        kh = kh * pl.reciprocal(k_norm, approx=True)

        # energy[e, q'] = sum_n qh[n, e] * kh[n, q']      ('bnhe,bnhq->behq')
        energy = jax.lax.dot_general(
            qh.astype(jnp.bfloat16), kh.astype(jnp.bfloat16),
            (((0,), (0,)), ((), ())), preferred_element_type=jnp.float32)  # (hd, hd)

        # softmax over the last axis in f32, then divide by tau AFTER softmax,
        # exactly as the reference torch module does (mh_out / self.tau).
        m = jnp.max(energy, axis=-1, keepdims=True)
        p = jnp.exp(energy - m)
        attn = p * pl.reciprocal(jnp.sum(p, axis=-1, keepdims=True), approx=True)
        attn = attn * inv_tau                       # broadcasts along the q' axis

        # out_h[n, q'] = sum_e vh[n, e] * attn[e, q']     ('behq,bnhe->bnhq')
        out_h = jnp.dot(vh.astype(jnp.bfloat16), attn.astype(jnp.bfloat16),
                        preferred_element_type=jnp.float32)                # (N, hd)

        # Final projection fused into the head loop: sublane-aligned row slice of
        # W_o (lo % 8 == 0) instead of a masked partial-lane scratch store.
        acc = acc + jnp.dot(out_h.astype(jnp.bfloat16), wo_ref[lo:lo + hd, :],
                            preferred_element_type=jnp.float32)

    out_ref[0] = acc + bo_ref[...]                  # (N, E) f32, lane-dense store


def prepare_params(p):
    """Host-side one-time prep: fuse Q/K/V weights into one (E, 3E) matrix and
    cast matmul weights to bf16. Biases and tau stay f32 (applied after the f32
    accumulation)."""
    wqkv = jnp.concatenate([p["wq"], p["wk"], p["wv"]], axis=1).astype(jnp.bfloat16)
    bqkv = jnp.concatenate([p["bq"], p["bk"], p["bv"]], axis=1).astype(jnp.float32)
    wo = p["wo"].astype(jnp.bfloat16)
    bo = p["bo"].astype(jnp.float32)
    tau = p["tau"].astype(jnp.float32)
    return wqkv, bqkv, wo, bo, tau


def mh_xcit_attention_forward(x, params, *, num_heads):
    B, N, E = x.shape
    assert E % num_heads == 0
    wqkv, bqkv, wo, bo, tau = prepare_params(params)
    param_list = [wqkv, bqkv, wo, bo, tau]

    kernel = functools.partial(_mh_xcit_attention_kernel, num_heads=num_heads)

    def _const_spec(p):  # weights: constant block, full array
        return pl.BlockSpec(p.shape, lambda b: (0, 0))

    in_specs = [pl.BlockSpec((1, N, E), lambda b: (b, 0, 0))]
    in_specs += [_const_spec(p) for p in param_list]

    return pl.pallas_call(
        kernel,
        out_shape=jax.ShapeDtypeStruct((B, N, E), jnp.float32),
        grid_spec=pltpu.PrefetchScalarGridSpec(
            num_scalar_prefetch=0,
            grid=(B,),
            in_specs=in_specs,
            out_specs=pl.BlockSpec((1, N, E), lambda b: (b, 0, 0)),
        ),
        compiler_params=pltpu.CompilerParams(
            dimension_semantics=("parallel",)),      # batches independent -> 2 TCs on v7x
    )(x, *param_list)


def init_params(key, *, embed, num_heads):
    """Parameters in torch-equivalent form (Linear weights transposed to (in, out))."""
    hd = embed // num_heads
    keys = jax.random.split(key, 8)

    def uni(k, shape, fan_in):
        bound = 1.0 / math.sqrt(fan_in)
        return jax.random.uniform(k, shape, jnp.float32, -bound, bound)

    p = {}
    p["wq"] = uni(keys[0], (embed, embed), embed); p["bq"] = uni(keys[1], (1, embed), embed)
    p["wk"] = uni(keys[2], (embed, embed), embed); p["bk"] = uni(keys[3], (1, embed), embed)
    p["wv"] = uni(keys[4], (embed, embed), embed); p["bv"] = uni(keys[5], (1, embed), embed)
    p["wo"] = uni(keys[6], (embed, embed), embed); p["bo"] = uni(keys[7], (1, embed), embed)
    p["tau"] = jnp.ones((1, hd), jnp.float32)  # torch.ones(embed // num_heads)
    return p


def mh_xcit_attention_reference(x, p, *, num_heads):
    """Pure-JAX f32 reference of the PyTorch forward (eval mode)."""
    B, N, E = x.shape
    hd = E // num_heads
    q = (x @ p["wq"] + p["bq"]).reshape(B, N, num_heads, hd)
    k = (x @ p["wk"] + p["bk"]).reshape(B, N, num_heads, hd)
    v = (x @ p["wv"] + p["bv"]).reshape(B, N, num_heads, hd)
    q = q / jnp.maximum(jnp.sqrt((q * q).sum(axis=1, keepdims=True)), _L2_EPS)
    k = k / jnp.maximum(jnp.sqrt((k * k).sum(axis=1, keepdims=True)), _L2_EPS)
    energy = jnp.einsum("bnhe,bnhq->behq", q, k)
    attn = jax.nn.softmax(energy, axis=-1) / p["tau"].reshape(hd)   # /tau after softmax
    out = jnp.einsum("behq,bnhe->bnhq", attn, v).reshape(B, N, E)
    return out @ p["wo"] + p["bo"]


if __name__ == "__main__":
    # Lane-dense small config: E is a multiple of 128, hd is a multiple of 8.
    B, N, E, num_heads = 2, 64, 128, 4
    key = jax.random.PRNGKey(0)
    kx, kp = jax.random.split(key)
    x = jax.random.normal(kx, (B, N, E), jnp.float32)
    params = init_params(kp, embed=E, num_heads=num_heads)

    out = mh_xcit_attention_forward(x, params, num_heads=num_heads)
    out = jax.block_until_ready(out)
    assert out.shape == (B, N, E)

    ref = mh_xcit_attention_reference(x, params, num_heads=num_heads)
    max_err = float(jnp.max(jnp.abs(out - ref)))
    # bf16 matmul operands + approx reciprocals vs an all-f32 reference.
    if not bool(jnp.allclose(out, ref, atol=1e-2, rtol=1e-2)):
        raise AssertionError(f"kernel/reference mismatch, max abs err = {max_err}")
    print("KERNEL_OK")
</pallas_src>

<mosaic_0001>
module attributes {stable_mosaic.version = 11 : i64} {
  func.func @_mh_xcit_attention_kernel(%arg0: i32, %arg1: memref<1x64x128xf32, #tpu.memory_space<vmem>>, %arg2: memref<128x384xbf16, #tpu.memory_space<vmem>>, %arg3: memref<1x384xf32, #tpu.memory_space<vmem>>, %arg4: memref<128x128xbf16, #tpu.memory_space<vmem>>, %arg5: memref<1x128xf32, #tpu.memory_space<vmem>>, %arg6: memref<1x32xf32, #tpu.memory_space<vmem>>, %arg7: memref<1x64x128xf32, #tpu.memory_space<vmem>>) attributes {dimension_semantics = [#tpu.dimension_semantics<parallel>], iteration_bounds = array<i64: 2>, scalar_prefetch = 0 : i64, scratch_operands = 0 : i64, tpu.core_type = #tpu.core_type<tc>, window_params = [{transform_indices = @transform_0, window_bounds = array<i64: 1, 64, 128>}, {pipeline_mode = #tpu.pipeline_mode<synchronous>, transform_indices = @transform_1, window_bounds = array<i64: 128, 384>}, {pipeline_mode = #tpu.pipeline_mode<synchronous>, transform_indices = @transform_2, window_bounds = array<i64: 1, 384>}, {pipeline_mode = #tpu.pipeline_mode<synchronous>, transform_indices = @transform_3, window_bounds = array<i64: 128, 128>}, {pipeline_mode = #tpu.pipeline_mode<synchronous>, transform_indices = @transform_4, window_bounds = array<i64: 1, 128>}, {pipeline_mode = #tpu.pipeline_mode<synchronous>, transform_indices = @transform_5, window_bounds = array<i64: 1, 32>}, {transform_indices = @transform_6, window_bounds = array<i64: 1, 64, 128>}]} {
    %c0 = arith.constant 0 : index
    %c0_0 = arith.constant 0 : index
    %c0_1 = arith.constant 0 : index
    %0 = vector.load %arg1[%c0, %c0_0, %c0_1] : memref<1x64x128xf32, #tpu.memory_space<vmem>>, vector<1x64x128xf32>
    %1 = vector.shape_cast %0 : vector<1x64x128xf32> to vector<64x128xf32>
    %2 = arith.truncf %1 : vector<64x128xf32> to vector<64x128xbf16>
    %c0_2 = arith.constant 0 : index
    %c0_3 = arith.constant 0 : index
    %3 = vector.load %arg2[%c0_2, %c0_3] : memref<128x384xbf16, #tpu.memory_space<vmem>>, vector<128x384xbf16>
    %cst = arith.constant dense<0.000000e+00> : vector<64x384xf32>
    %4 = tpu.matmul %2, %3, %cst {dimension_numbers = #tpu.dot_dimension_numbers<[1], [0], [0], [1], [0, 0, 1, 1], [], []>} : vector<64x128xbf16>, vector<128x384xbf16>, vector<64x384xf32> -> vector<64x384xf32>
    %c0_4 = arith.constant 0 : index
    %c0_5 = arith.constant 0 : index
    %5 = vector.load %arg3[%c0_4, %c0_5] : memref<1x384xf32, #tpu.memory_space<vmem>>, vector<1x384xf32>
    %6 = vector.broadcast %5 : vector<1x384xf32> to vector<64x384xf32>
    %7 = arith.addf %4, %6 : vector<64x384xf32>
    %8 = vector.extract_strided_slice %7 {offsets = [0, 0], sizes = [64, 128], strides = [1, 1]} : vector<64x384xf32> to vector<64x128xf32>
    %9 = vector.extract_strided_slice %7 {offsets = [0, 128], sizes = [64, 128], strides = [1, 1]} : vector<64x384xf32> to vector<64x128xf32>
    %10 = vector.extract_strided_slice %7 {offsets = [0, 256], sizes = [64, 128], strides = [1, 1]} : vector<64x384xf32> to vector<64x128xf32>
    %c0_6 = arith.constant 0 : index
    %c0_7 = arith.constant 0 : index
    %11 = vector.load %arg6[%c0_6, %c0_7] : memref<1x32xf32, #tpu.memory_space<vmem>>, vector<1x32xf32>
    %12 = tpu.reciprocal %11 {approx = true} : vector<1x32xf32> -> vector<1x32xf32>
    %cst_8 = arith.constant 0.000000e+00 : f32
    %13 = vector.broadcast %cst_8 : f32 to vector<64x128xf32>
    %14 = vector.extract_strided_slice %8 {offsets = [0, 0], sizes = [64, 32], strides = [1, 1]} : vector<64x128xf32> to vector<64x32xf32>
    %15 = vector.extract_strided_slice %9 {offsets = [0, 0], sizes = [64, 32], strides = [1, 1]} : vector<64x128xf32> to vector<64x32xf32>
    %16 = vector.extract_strided_slice %10 {offsets = [0, 0], sizes = [64, 32], strides = [1, 1]} : vector<64x128xf32> to vector<64x32xf32>
    %17 = arith.mulf %14, %14 : vector<64x32xf32>
    %cst_9 = arith.constant dense<0.000000e+00> : vector<32xf32>
    %18 = vector.multi_reduction <add>, %17, %cst_9 [0] : vector<64x32xf32> to vector<32xf32>
    %19 = vector.shape_cast %18 : vector<32xf32> to vector<1x32xf32>
    %20 = math.sqrt %19 : vector<1x32xf32>
    %cst_10 = arith.constant 9.99999996E-13 : f32
    %21 = vector.broadcast %cst_10 : f32 to vector<1x32xf32>
    %22 = arith.maximumf %20, %21 : vector<1x32xf32>
    %23 = arith.mulf %15, %15 : vector<64x32xf32>
    %cst_11 = arith.constant dense<0.000000e+00> : vector<32xf32>
    %24 = vector.multi_reduction <add>, %23, %cst_11 [0] : vector<64x32xf32> to vector<32xf32>
    %25 = vector.shape_cast %24 : vector<32xf32> to vector<1x32xf32>
    %26 = math.sqrt %25 : vector<1x32xf32>
    %cst_12 = arith.constant 9.99999996E-13 : f32
    %27 = vector.broadcast %cst_12 : f32 to vector<1x32xf32>
    %28 = arith.maximumf %26, %27 : vector<1x32xf32>
    %29 = tpu.reciprocal %22 {approx = true} : vector<1x32xf32> -> vector<1x32xf32>
    %30 = vector.broadcast %29 : vector<1x32xf32> to vector<64x32xf32>
    %31 = arith.mulf %14, %30 : vector<64x32xf32>
    %32 = tpu.reciprocal %28 {approx = true} : vector<1x32xf32> -> vector<1x32xf32>
    %33 = vector.broadcast %32 : vector<1x32xf32> to vector<64x32xf32>
    %34 = arith.mulf %15, %33 : vector<64x32xf32>
    %35 = arith.truncf %31 : vector<64x32xf32> to vector<64x32xbf16>
    %36 = arith.truncf %34 : vector<64x32xf32> to vector<64x32xbf16>
    %cst_13 = arith.constant dense<0.000000e+00> : vector<32x32xf32>
    %37 = tpu.matmul %35, %36, %cst_13 {dimension_numbers = #tpu.dot_dimension_numbers<[0], [0], [1], [1], [0, 1, 1, 1], [], []>} : vector<64x32xbf16>, vector<64x32xbf16>, vector<32x32xf32> -> vector<32x32xf32>
    %cst_14 = arith.constant dense<0xFF800000> : vector<32xf32>
    %38 = vector.multi_reduction <maximumf>, %37, %cst_14 [1] : vector<32x32xf32> to vector<32xf32>
    %39 = vector.shape_cast %38 : vector<32xf32> to vector<32x1xf32>
    %40 = vector.broadcast %39 : vector<32x1xf32> to vector<32x32xf32>
    %41 = arith.subf %37, %40 : vector<32x32xf32>
    %42 = math.exp %41 : vector<32x32xf32>
    %cst_15 = arith.constant dense<0.000000e+00> : vector<32xf32>
    %43 = vector.multi_reduction <add>, %42, %cst_15 [1] : vector<32x32xf32> to vector<32xf32>
    %44 = vector.shape_cast %43 : vector<32xf32> to vector<32x1xf32>
    %45 = tpu.reciprocal %44 {approx = true} : vector<32x1xf32> -> vector<32x1xf32>
    %46 = vector.broadcast %45 : vector<32x1xf32> to vector<32x32xf32>
    %47 = arith.mulf %42, %46 : vector<32x32xf32>
    %48 = vector.broadcast %12 : vector<1x32xf32> to vector<32x32xf32>
    %49 = arith.mulf %47, %48 : vector<32x32xf32>
    %50 = arith.truncf %16 : vector<64x32xf32> to vector<64x32xbf16>
    %51 = arith.truncf %49 : vector<32x32xf32> to vector<32x32xbf16>
    %cst_16 = arith.constant dense<0.000000e+00> : vector<64x32xf32>
    %52 = tpu.matmul %50, %51, %cst_16 {dimension_numbers = #tpu.dot_dimension_numbers<[1], [0], [0], [1], [0, 0, 1, 1], [], []>} : vector<64x32xbf16>, vector<32x32xbf16>, vector<64x32xf32> -> vector<64x32xf32>
    %53 = arith.truncf %52 : vector<64x32xf32> to vector<64x32xbf16>
    %c0_17 = arith.constant 0 : index
    %c0_18 = arith.constant 0 : index
    %54 = vector.load %arg4[%c0_17, %c0_18] : memref<128x128xbf16, #tpu.memory_space<vmem>>, vector<32x128xbf16>
    %cst_19 = arith.constant dense<0.000000e+00> : vector<64x128xf32>
    %55 = tpu.matmul %53, %54, %cst_19 {dimension_numbers = #tpu.dot_dimension_numbers<[1], [0], [0], [1], [0, 0, 1, 1], [], []>} : vector<64x32xbf16>, vector<32x128xbf16>, vector<64x128xf32> -> vector<64x128xf32>
    %56 = arith.addf %13, %55 : vector<64x128xf32>
    %57 = vector.extract_strided_slice %8 {offsets = [0, 32], sizes = [64, 32], strides = [1, 1]} : vector<64x128xf32> to vector<64x32xf32>
    %58 = vector.extract_strided_slice %9 {offsets = [0, 32], sizes = [64, 32], strides = [1, 1]} : vector<64x128xf32> to vector<64x32xf32>
    %59 = vector.extract_strided_slice %10 {offsets = [0, 32], sizes = [64, 32], strides = [1, 1]} : vector<64x128xf32> to vector<64x32xf32>
    %60 = arith.mulf %57, %57 : vector<64x32xf32>
    %cst_20 = arith.constant dense<0.000000e+00> : vector<32xf32>
    %61 = vector.multi_reduction <add>, %60, %cst_20 [0] : vector<64x32xf32> to vector<32xf32>
    %62 = vector.shape_cast %61 : vector<32xf32> to vector<1x32xf32>
    %63 = math.sqrt %62 : vector<1x32xf32>
    %cst_21 = arith.constant 9.99999996E-13 : f32
    %64 = vector.broadcast %cst_21 : f32 to vector<1x32xf32>
    %65 = arith.maximumf %63, %64 : vector<1x32xf32>
    %66 = arith.mulf %58, %58 : vector<64x32xf32>
    %cst_22 = arith.constant dense<0.000000e+00> : vector<32xf32>
    %67 = vector.multi_reduction <add>, %66, %cst_22 [0] : vector<64x32xf32> to vector<32xf32>
    %68 = vector.shape_cast %67 : vector<32xf32> to vector<1x32xf32>
    %69 = math.sqrt %68 : vector<1x32xf32>
    %cst_23 = arith.constant 9.99999996E-13 : f32
    %70 = vector.broadcast %cst_23 : f32 to vector<1x32xf32>
    %71 = arith.maximumf %69, %70 : vector<1x32xf32>
    %72 = tpu.reciprocal %65 {approx = true} : vector<1x32xf32> -> vector<1x32xf32>
    %73 = vector.broadcast %72 : vector<1x32xf32> to vector<64x32xf32>
    %74 = arith.mulf %57, %73 : vector<64x32xf32>
    %75 = tpu.reciprocal %71 {approx = true} : vector<1x32xf32> -> vector<1x32xf32>
    %76 = vector.broadcast %75 : vector<1x32xf32> to vector<64x32xf32>
    %77 = arith.mulf %58, %76 : vector<64x32xf32>
    %78 = arith.truncf %74 : vector<64x32xf32> to vector<64x32xbf16>
    %79 = arith.truncf %77 : vector<64x32xf32> to vector<64x32xbf16>
    %cst_24 = arith.constant dense<0.000000e+00> : vector<32x32xf32>
    %80 = tpu.matmul %78, %79, %cst_24 {dimension_numbers = #tpu.dot_dimension_numbers<[0], [0], [1], [1], [0, 1, 1, 1], [], []>} : vector<64x32xbf16>, vector<64x32xbf16>, vector<32x32xf32> -> vector<32x32xf32>
    %cst_25 = arith.constant dense<0xFF800000> : vector<32xf32>
    %81 = vector.multi_reduction <maximumf>, %80, %cst_25 [1] : vector<32x32xf32> to vector<32xf32>
    %82 = vector.shape_cast %81 : vector<32xf32> to vector<32x1xf32>
    %83 = vector.broadcast %82 : vector<32x1xf32> to vector<32x32xf32>
    %84 = arith.subf %80, %83 : vector<32x32xf32>
    %85 = math.exp %84 : vector<32x32xf32>
    %cst_26 = arith.constant dense<0.000000e+00> : vector<32xf32>
    %86 = vector.multi_reduction <add>, %85, %cst_26 [1] : vector<32x32xf32> to vector<32xf32>
    %87 = vector.shape_cast %86 : vector<32xf32> to vector<32x1xf32>
    %88 = tpu.reciprocal %87 {approx = true} : vector<32x1xf32> -> vector<32x1xf32>
    %89 = vector.broadcast %88 : vector<32x1xf32> to vector<32x32xf32>
    %90 = arith.mulf %85, %89 : vector<32x32xf32>
    %91 = vector.broadcast %12 : vector<1x32xf32> to vector<32x32xf32>
    %92 = arith.mulf %90, %91 : vector<32x32xf32>
    %93 = arith.truncf %59 : vector<64x32xf32> to vector<64x32xbf16>
    %94 = arith.truncf %92 : vector<32x32xf32> to vector<32x32xbf16>
    %cst_27 = arith.constant dense<0.000000e+00> : vector<64x32xf32>
    %95 = tpu.matmul %93, %94, %cst_27 {dimension_numbers = #tpu.dot_dimension_numbers<[1], [0], [0], [1], [0, 0, 1, 1], [], []>} : vector<64x32xbf16>, vector<32x32xbf16>, vector<64x32xf32> -> vector<64x32xf32>
    %96 = arith.truncf %95 : vector<64x32xf32> to vector<64x32xbf16>
    %c32 = arith.constant 32 : index
    %c0_28 = arith.constant 0 : index
    %97 = vector.load %arg4[%c32, %c0_28] : memref<128x128xbf16, #tpu.memory_space<vmem>>, vector<32x128xbf16>
    %cst_29 = arith.constant dense<0.000000e+00> : vector<64x128xf32>
    %98 = tpu.matmul %96, %97, %cst_29 {dimension_numbers = #tpu.dot_dimension_numbers<[1], [0], [0], [1], [0, 0, 1, 1], [], []>} : vector<64x32xbf16>, vector<32x128xbf16>, vector<64x128xf32> -> vector<64x128xf32>
    %99 = arith.addf %56, %98 : vector<64x128xf32>
    %100 = vector.extract_strided_slice %8 {offsets = [0, 64], sizes = [64, 32], strides = [1, 1]} : vector<64x128xf32> to vector<64x32xf32>
    %101 = vector.extract_strided_slice %9 {offsets = [0, 64], sizes = [64, 32], strides = [1, 1]} : vector<64x128xf32> to vector<64x32xf32>
    %102 = vector.extract_strided_slice %10 {offsets = [0, 64], sizes = [64, 32], strides = [1, 1]} : vector<64x128xf32> to vector<64x32xf32>
    %103 = arith.mulf %100, %100 : vector<64x32xf32>
    %cst_30 = arith.constant dense<0.000000e+00> : vector<32xf32>
    %104 = vector.multi_reduction <add>, %103, %cst_30 [0] : vector<64x32xf32> to vector<32xf32>
    %105 = vector.shape_cast %104 : vector<32xf32> to vector<1x32xf32>
    %106 = math.sqrt %105 : vector<1x32xf32>
    %cst_31 = arith.constant 9.99999996E-13 : f32
    %107 = vector.broadcast %cst_31 : f32 to vector<1x32xf32>
    %108 = arith.maximumf %106, %107 : vector<1x32xf32>
    %109 = arith.mulf %101, %101 : vector<64x32xf32>
    %cst_32 = arith.constant dense<0.000000e+00> : vector<32xf32>
    %110 = vector.multi_reduction <add>, %109, %cst_32 [0] : vector<64x32xf32> to vector<32xf32>
    %111 = vector.shape_cast %110 : vector<32xf32> to vector<1x32xf32>
    %112 = math.sqrt %111 : vector<1x32xf32>
    %cst_33 = arith.constant 9.99999996E-13 : f32
    %113 = vector.broadcast %cst_33 : f32 to vector<1x32xf32>
    %114 = arith.maximumf %112, %113 : vector<1x32xf32>
    %115 = tpu.reciprocal %108 {approx = true} : vector<1x32xf32> -> vector<1x32xf32>
    %116 = vector.broadcast %115 : vector<1x32xf32> to vector<64x32xf32>
    %117 = arith.mulf %100, %116 : vector<64x32xf32>
    %118 = tpu.reciprocal %114 {approx = true} : vector<1x32xf32> -> vector<1x32xf32>
    %119 = vector.broadcast %118 : vector<1x32xf32> to vector<64x32xf32>
    %120 = arith.mulf %101, %119 : vector<64x32xf32>
    %121 = arith.truncf %117 : vector<64x32xf32> to vector<64x32xbf16>
    %122 = arith.truncf %120 : vector<64x32xf32> to vector<64x32xbf16>
    %cst_34 = arith.constant dense<0.000000e+00> : vector<32x32xf32>
    %123 = tpu.matmul %121, %122, %cst_34 {dimension_numbers = #tpu.dot_dimension_numbers<[0], [0], [1], [1], [0, 1, 1, 1], [], []>} : vector<64x32xbf16>, vector<64x32xbf16>, vector<32x32xf32> -> vector<32x32xf32>
    %cst_35 = arith.constant dense<0xFF800000> : vector<32xf32>
    %124 = vector.multi_reduction <maximumf>, %123, %cst_35 [1] : vector<32x32xf32> to vector<32xf32>
    %125 = vector.shape_cast %124 : vector<32xf32> to vector<32x1xf32>
    %126 = vector.broadcast %125 : vector<32x1xf32> to vector<32x32xf32>
    %127 = arith.subf %123, %126 : vector<32x32xf32>
    %128 = math.exp %127 : vector<32x32xf32>
    %cst_36 = arith.constant dense<0.000000e+00> : vector<32xf32>
    %129 = vector.multi_reduction <add>, %128, %cst_36 [1] : vector<32x32xf32> to vector<32xf32>
    %130 = vector.shape_cast %129 : vector<32xf32> to vector<32x1xf32>
    %131 = tpu.reciprocal %130 {approx = true} : vector<32x1xf32> -> vector<32x1xf32>
    %132 = vector.broadcast %131 : vector<32x1xf32> to vector<32x32xf32>
    %133 = arith.mulf %128, %132 : vector<32x32xf32>
    %134 = vector.broadcast %12 : vector<1x32xf32> to vector<32x32xf32>
    %135 = arith.mulf %133, %134 : vector<32x32xf32>
    %136 = arith.truncf %102 : vector<64x32xf32> to vector<64x32xbf16>
    %137 = arith.truncf %135 : vector<32x32xf32> to vector<32x32xbf16>
    %cst_37 = arith.constant dense<0.000000e+00> : vector<64x32xf32>
    %138 = tpu.matmul %136, %137, %cst_37 {dimension_numbers = #tpu.dot_dimension_numbers<[1], [0], [0], [1], [0, 0, 1, 1], [], []>} : vector<64x32xbf16>, vector<32x32xbf16>, vector<64x32xf32> -> vector<64x32xf32>
    %139 = arith.truncf %138 : vector<64x32xf32> to vector<64x32xbf16>
    %c64 = arith.constant 64 : index
    %c0_38 = arith.constant 0 : index
    %140 = vector.load %arg4[%c64, %c0_38] : memref<128x128xbf16, #tpu.memory_space<vmem>>, vector<32x128xbf16>
    %cst_39 = arith.constant dense<0.000000e+00> : vector<64x128xf32>
    %141 = tpu.matmul %139, %140, %cst_39 {dimension_numbers = #tpu.dot_dimension_numbers<[1], [0], [0], [1], [0, 0, 1, 1], [], []>} : vector<64x32xbf16>, vector<32x128xbf16>, vector<64x128xf32> -> vector<64x128xf32>
    %142 = arith.addf %99, %141 : vector<64x128xf32>
    %143 = vector.extract_strided_slice %8 {offsets = [0, 96], sizes = [64, 32], strides = [1, 1]} : vector<64x128xf32> to vector<64x32xf32>
    %144 = vector.extract_strided_slice %9 {offsets = [0, 96], sizes = [64, 32], strides = [1, 1]} : vector<64x128xf32> to vector<64x32xf32>
    %145 = vector.extract_strided_slice %10 {offsets = [0, 96], sizes = [64, 32], strides = [1, 1]} : vector<64x128xf32> to vector<64x32xf32>
    %146 = arith.mulf %143, %143 : vector<64x32xf32>
    %cst_40 = arith.constant dense<0.000000e+00> : vector<32xf32>
    %147 = vector.multi_reduction <add>, %146, %cst_40 [0] : vector<64x32xf32> to vector<32xf32>
    %148 = vector.shape_cast %147 : vector<32xf32> to vector<1x32xf32>
    %149 = math.sqrt %148 : vector<1x32xf32>
    %cst_41 = arith.constant 9.99999996E-13 : f32
    %150 = vector.broadcast %cst_41 : f32 to vector<1x32xf32>
    %151 = arith.maximumf %149, %150 : vector<1x32xf32>
    %152 = arith.mulf %144, %144 : vector<64x32xf32>
    %cst_42 = arith.constant dense<0.000000e+00> : vector<32xf32>
    %153 = vector.multi_reduction <add>, %152, %cst_42 [0] : vector<64x32xf32> to vector<32xf32>
    %154 = vector.shape_cast %153 : vector<32xf32> to vector<1x32xf32>
    %155 = math.sqrt %154 : vector<1x32xf32>
    %cst_43 = arith.constant 9.99999996E-13 : f32
    %156 = vector.broadcast %cst_43 : f32 to vector<1x32xf32>
    %157 = arith.maximumf %155, %156 : vector<1x32xf32>
    %158 = tpu.reciprocal %151 {approx = true} : vector<1x32xf32> -> vector<1x32xf32>
    %159 = vector.broadcast %158 : vector<1x32xf32> to vector<64x32xf32>
    %160 = arith.mulf %143, %159 : vector<64x32xf32>
    %161 = tpu.reciprocal %157 {approx = true} : vector<1x32xf32> -> vector<1x32xf32>
    %162 = vector.broadcast %161 : vector<1x32xf32> to vector<64x32xf32>
    %163 = arith.mulf %144, %162 : vector<64x32xf32>
    %164 = arith.truncf %160 : vector<64x32xf32> to vector<64x32xbf16>
    %165 = arith.truncf %163 : vector<64x32xf32> to vector<64x32xbf16>
    %cst_44 = arith.constant dense<0.000000e+00> : vector<32x32xf32>
    %166 = tpu.matmul %164, %165, %cst_44 {dimension_numbers = #tpu.dot_dimension_numbers<[0], [0], [1], [1], [0, 1, 1, 1], [], []>} : vector<64x32xbf16>, vector<64x32xbf16>, vector<32x32xf32> -> vector<32x32xf32>
    %cst_45 = arith.constant dense<0xFF800000> : vector<32xf32>
    %167 = vector.multi_reduction <maximumf>, %166, %cst_45 [1] : vector<32x32xf32> to vector<32xf32>
    %168 = vector.shape_cast %167 : vector<32xf32> to vector<32x1xf32>
    %169 = vector.broadcast %168 : vector<32x1xf32> to vector<32x32xf32>
    %170 = arith.subf %166, %169 : vector<32x32xf32>
    %171 = math.exp %170 : vector<32x32xf32>
    %cst_46 = arith.constant dense<0.000000e+00> : vector<32xf32>
    %172 = vector.multi_reduction <add>, %171, %cst_46 [1] : vector<32x32xf32> to vector<32xf32>
    %173 = vector.shape_cast %172 : vector<32xf32> to vector<32x1xf32>
    %174 = tpu.reciprocal %173 {approx = true} : vector<32x1xf32> -> vector<32x1xf32>
    %175 = vector.broadcast %174 : vector<32x1xf32> to vector<32x32xf32>
    %176 = arith.mulf %171, %175 : vector<32x32xf32>
    %177 = vector.broadcast %12 : vector<1x32xf32> to vector<32x32xf32>
    %178 = arith.mulf %176, %177 : vector<32x32xf32>
    %179 = arith.truncf %145 : vector<64x32xf32> to vector<64x32xbf16>
    %180 = arith.truncf %178 : vector<32x32xf32> to vector<32x32xbf16>
    %cst_47 = arith.constant dense<0.000000e+00> : vector<64x32xf32>
    %181 = tpu.matmul %179, %180, %cst_47 {dimension_numbers = #tpu.dot_dimension_numbers<[1], [0], [0], [1], [0, 0, 1, 1], [], []>} : vector<64x32xbf16>, vector<32x32xbf16>, vector<64x32xf32> -> vector<64x32xf32>
    %182 = arith.truncf %181 : vector<64x32xf32> to vector<64x32xbf16>
    %c96 = arith.constant 96 : index
    %c0_48 = arith.constant 0 : index
    %183 = vector.load %arg4[%c96, %c0_48] : memref<128x128xbf16, #tpu.memory_space<vmem>>, vector<32x128xbf16>
    %cst_49 = arith.constant dense<0.000000e+00> : vector<64x128xf32>
    %184 = tpu.matmul %182, %183, %cst_49 {dimension_numbers = #tpu.dot_dimension_numbers<[1], [0], [0], [1], [0, 0, 1, 1], [], []>} : vector<64x32xbf16>, vector<32x128xbf16>, vector<64x128xf32> -> vector<64x128xf32>
    %185 = arith.addf %142, %184 : vector<64x128xf32>
    %c0_50 = arith.constant 0 : index
    %c0_51 = arith.constant 0 : index
    %186 = vector.load %arg5[%c0_50, %c0_51] : memref<1x128xf32, #tpu.memory_space<vmem>>, vector<1x128xf32>
    %187 = vector.broadcast %186 : vector<1x128xf32> to vector<64x128xf32>
    %188 = arith.addf %185, %187 : vector<64x128xf32>
    %c0_52 = arith.constant 0 : index
    %c0_53 = arith.constant 0 : index
    %c0_54 = arith.constant 0 : index
    %189 = vector.load %arg7[%c0_52, %c0_53, %c0_54] : memref<1x64x128xf32, #tpu.memory_space<vmem>>, vector<1x64x128xf32>
    %190 = vector.shape_cast %189 : vector<1x64x128xf32> to vector<64x128xf32>
    %191 = vector.shape_cast %188 : vector<64x128xf32> to vector<1x64x128xf32>
    tpu.vector_store %arg7[%c0_52, %c0_53, %c0_54], %191 {strides = array<i32>} : memref<1x64x128xf32, #tpu.memory_space<vmem>>, vector<1x64x128xf32>,
    return
  }
  func.func @transform_0(%arg0: i32) -> (i32, i32, i32) {
    %c0_i32 = arith.constant 0 : i32
    %c0_i32_0 = arith.constant 0 : i32
    %c0_i32_1 = arith.constant 0 : i32
    return %arg0, %c0_i32, %c0_i32_0 : i32, i32, i32
  }
  func.func @transform_1(%arg0: i32) -> (i32, i32) {
    %c0_i32 = arith.constant 0 : i32
    %c0_i32_0 = arith.constant 0 : i32
    %c0_i32_1 = arith.constant 0 : i32
    return %c0_i32, %c0_i32_0 : i32, i32
  }
  func.func @transform_2(%arg0: i32) -> (i32, i32) {
    %c0_i32 = arith.constant 0 : i32
    %c0_i32_0 = arith.constant 0 : i32
    %c0_i32_1 = arith.constant 0 : i32
    return %c0_i32, %c0_i32_0 : i32, i32
  }
  func.func @transform_3(%arg0: i32) -> (i32, i32) {
    %c0_i32 = arith.constant 0 : i32
    %c0_i32_0 = arith.constant 0 : i32
    %c0_i32_1 = arith.constant 0 : i32
    return %c0_i32, %c0_i32_0 : i32, i32
  }
  func.func @transform_4(%arg0: i32) -> (i32, i32) {
    %c0_i32 = arith.constant 0 : i32
    %c0_i32_0 = arith.constant 0 : i32
    %c0_i32_1 = arith.constant 0 : i32
    return %c0_i32, %c0_i32_0 : i32, i32
  }
  func.func @transform_5(%arg0: i32) -> (i32, i32) {
    %c0_i32 = arith.constant 0 : i32
    %c0_i32_0 = arith.constant 0 : i32
    %c0_i32_1 = arith.constant 0 : i32
    return %c0_i32, %c0_i32_0 : i32, i32
  }
  func.func @transform_6(%arg0: i32) -> (i32, i32, i32) {
    %c0_i32 = arith.constant 0 : i32
    %c0_i32_0 = arith.constant 0 : i32
    %c0_i32_1 = arith.constant 0 : i32
    return %arg0, %c0_i32, %c0_i32_0 : i32, i32, i32
  }
}

</mosaic_0001>

<bundles_post_ra>
// kernel: tpu_custom_call.1
= control target key start
LH: loop header
LB: loop body
LE: loop exit
PB: predicated region body
PF: predicated region fallthrough
CT: control target
= control target key end

     0   :  { %11 = vsyncpa [#allocation3], 0  ;;  %s4036_s0 = inlined_call_operand.hbm [shape: f32[2,64,128], index: 0, kind: input, shape index: {}]   ;;  %s4037_s1 = inlined_call_operand.hbm [shape: bf16[128,384], index: 1, kind: input, shape index: {}]   ;;  %s4038_s2 = inlined_call_operand.vmem [shape: f32[1,384], index: 2, kind: input, shape index: {}]   ;;  %s4039_s3 = inlined_call_operand.hbm [shape: bf16[128,128], index: 3, kind: input, shape index: {}]   ;;  %s4040_s4 = inlined_call_operand.vmem [shape: f32[1,128], index: 4, kind: input, shape index: {}]   ;;  %s4041_s5 = inlined_call_operand.vmem [shape: f32[1,32], index: 5, kind: input, shape index: {}]   ;;  %s4042_s6 = inlined_call_operand.hbm [shape: f32[2,64,128], index: 6, kind: output, shape index: {}]  }
   0x1   :  { %13 = vsyncpa [#allocation3 + $0x1], 0 }
   0x2   :  { %14 = vsyncpa [#allocation6], 0 }
   0x3   :  { %15 = vsyncpa [#allocation4], 0 }
   0x4   :  { %17 = vsyncpa [#allocation4 + $0x1], 0  ;;  %s3240_s21 = smov 0   ;;  %s3242_s22 = smov 0  }
   0x5   :  { %s3244_s23 = smov 0   ;;  %s3246_s24 = smov 0  }
   0x6 LB: > { %s3261_s25 = sadd.s32 4294967295, %s3187_s24   ;;  %s2445_s26 = sadd.s32 4294967294, %s3187_s24   ;;  %s3187_s24 = sphi %s3246_s24, %s4062_s24   ;;  %s3183_s23 = sphi %s3244_s23, %s4061_s23   ;;  %s3179_s22 = sphi %s3242_s22, %s4060_s22   ;;  %s3175_s21 = sphi %s3240_s21, %s4059_s21  }
   0x7   : > { %p43_p0 = scmp.ne.s32.totalorder %s3179_s22, %s3175_s21  ;;  %p4043_p1 = scmp.eq.s32.totalorder %s3261_s25, 0 }
   0x8   : > { %p178_p3 = scmp.eq.s32.totalorder %s2445_s26, 1  ;;  %p2446_p5 = scmp.ge.s32.totalorder %s3187_s24, 1 }
   0x9   : > { %p3270_p4 = por %p4043_p1, %p43_p0  ;;  %p185_p7 = scmp.lt.s32.totalorder %s3187_s24, 3 }
   0xa   : > { %p3275_p6 = por %p178_p3, %p43_p0  ;;  %s3189_s30 = smov [#allocation5]  }
   0xb   : > { %s4046_s27 = scalar_select %p3270_p4, 1, 0 }
   0xc   : > { %s4047_s28 = scalar_select %p3275_p6, 1, 0 }
   0xd   : > { %p3280_p8 = pnand %p2446_p5, %p185_p7  ;;  %s197_s7 = sshll.u32 %s3189_s30, 4  ;;  %s3284_s7 = int_to_ptr.vmem [resolvable:$true] %s197_s7 }
   0xe   : > { %s3190_s9 = smov [#allocation7]   ;;  %s3031_s13 = scalar_lea.hbm %s4037_s1, 3072 }
   0xf   : > { %p2826_p9 = pneg %p3280_p8  ;;  %s213_s10 = sshll.u32 %s3190_s9, 4  ;;  %s3295_s10 = int_to_ptr.vmem [resolvable:$true] %s213_s10 }
  0x10   : > { %p3032_p12 = scmp.ne.s32.totalorder %s4037_s1, %s3031_s13  ;;  %p3038_p5 = scmp.lt.u32.totalorder %s3031_s13, %s4037_s1 }
  0x11   : > { %p3291_p11 = pnand %p2826_p9, %p4043_p1 }
  0x13   : > { %p3033_p13 = pneg %p3291_p11 }
  0x15   : > { %p3034_p0 = pnand %p3033_p13, %p3032_p12 }
  0x17   : > { %p3035_p3 = pneg %p3034_p0 }
  0x19   : > { %p3040_p7 = pnand %p3038_p5, %p3035_p3 }
  0x1b   : > { %3043 = shalt.err (!%p3040_p7)
}
  0x1c   : > { %s3044_s18 = scalar_lea.vmem %s3284_s7, 3072  ;;  %p3052_p2 = scmp.lt.s32.totalorder %s3284_s7, %s3284_s7 }
  0x1d   : > { %p3045_p9 = scmp.ne.s32.totalorder %s3284_s7, %s3044_s18  ;;  %p3053_p12 = scmp.lt.s32.totalorder %s3044_s18, %s3044_s18 }
  0x1f   : > { %p3047_p10 = pnand %p3045_p9, %p3033_p13  ;;  %p3054_p0 = por %p3053_p12, %p3052_p2 }
  0x21   : > { %p3048_p1 = pneg %p3047_p10 }
  0x23   : > { %p3055_p6 = pnand %p3054_p0, %p3048_p1 }
  0x25   : > { %3058 = shalt.err (!%p3055_p6)
}
  0x26   : > { %s3191_s19 = smov 192   ;;  %s3192_s20 = smov 12  }
  0x27   : > { %2829 = dma.hbm_to_vmem [thread:$0]  (!%p3291_p11), %s4037_s1, 3072, %s3284_s7, [#allocation6], %s3191_s19, %s3191_s19, %s3192_s20  }
  0x28   : > { %s3059_s12 = scalar_lea.hbm %s4039_s3, 1024 }
  0x29   : > { %p3060_p2 = scmp.ne.s32.totalorder %s4039_s3, %s3059_s12  ;;  %p3066_p10 = scmp.lt.u32.totalorder %s3059_s12, %s4039_s3 }
  0x2b   : > { %p3062_p1 = pnand %p3060_p2, %p3033_p13 }
  0x2d   : > { %p3063_p6 = pneg %p3062_p1 }
  0x2f   : > { %p3068_p3 = pnand %p3066_p10, %p3063_p6 }
  0x31   : > { %3071 = shalt.err (!%p3068_p3)
}
  0x32   : > { %s3072_s7 = scalar_lea.vmem %s3295_s10, 1024  ;;  %p3080_p12 = scmp.lt.s32.totalorder %s3295_s10, %s3295_s10 }
  0x33   : > { %p3073_p5 = scmp.ne.s32.totalorder %s3295_s10, %s3072_s7  ;;  %p3081_p0 = scmp.lt.s32.totalorder %s3072_s7, %s3072_s7 }
  0x35   : > { %p3075_p7 = pnand %p3073_p5, %p3033_p13  ;;  %p3082_p2 = por %p3081_p0, %p3080_p12 }
  0x37   : > { %p3076_p9 = pneg %p3075_p7 }
  0x39   : > { %p3083_p1 = pnand %p3082_p2, %p3076_p9 }
  0x3b   : > { %3086 = shalt.err (!%p3083_p1)
}
  0x3c   : > { %s3193_s17 = smov 64   ;;  %s3194_s18 = smov 4  }
  0x3d   : > { %2832 = dma.hbm_to_vmem [thread:$0]  (!%p3291_p11), %s4039_s3, 1024, %s3295_s10, [#allocation6], %s3193_s17, %s3193_s17, %s3194_s18  }
  0x3e   : > { %s3350_s26 = sadd.s32 1, %s3187_s24   ;;  %s30_s9 = sadd.s32 1, %s3183_s23 }
  0x3f   : > { %s27_s30 = ssub.s32 %s3187_s24, %s3350_s26  ;;  %p37_p6 = scmp.ne.s32.totalorder %s3183_s23, %s3179_s22 }
  0x40   : > { %p28_p13 = scmp.eq.s32.totalorder %s27_s30, 0  ;;  %p38_p10 = scmp.eq.s32.totalorder %s3187_s24, 0 }
  0x41   : > { %p4050_p5 = scmp.eq.s32.totalorder %s3261_s25, 1  ;;  %p2843_p9 = scmp.lt.s32.totalorder %s3187_s24, 2 }
  0x42   : > { %s3359_s11 = scalar_select %p28_p13, %s3183_s23, %s30_s9  }
  0x43   : > { %p39_p3 = por %p38_p10, %p37_p6  ;;  %p3363_p7 = por %p4050_p5, %p37_p6 }
  0x44   : > { %s233_s8 = sand.u32 1, %s3183_s23   ;;  %s2536_s10 = sshll.u32 %s3187_s24, 10 }
  0x45   : > { %s4051_s12 = scalar_select %p3363_p7, 1, 0 }
  0x46   : > { %s2450_s13 = sshll.u32 %s233_s8, 6  ;;  %s3373_s16 = scalar_lea.hbm %s4036_s0, %s2536_s10 }
  0x47   : > { %s237_s7 = scalar_lea.vmem [#allocation2], %s2450_s13  ;;  %p3377_p11 = pnand %p2843_p9, %p39_p3 }
  0x48   : > { %s244_s17 = sshll.u32 %s237_s7, 4  ;;  %s3381_s19 = scalar_lea.sflag [#allocation3], %s233_s8  ;;  %s3375_s17 = int_to_ptr.vmem [resolvable:$true] %s244_s17 }
  0x49   : > { %s3087_s20 = scalar_lea.hbm %s3373_s16, 1024  ;;  %p3089_p0 = pneg %p3377_p11 }
  0x4a   : > { %p3088_p12 = scmp.ne.s32.totalorder %s3373_s16, %s3087_s20  ;;  %s3092_s13 = scalar_lea.hbm %s4036_s0, 2048 }
  0x4b   : > { %p3093_p13 = scmp.lt.u32.totalorder %s3373_s16, %s4036_s0  ;;  %p3094_p6 = scmp.lt.u32.totalorder %s3092_s13, %s3087_s20 }
  0x4c   : > { %p3090_p2 = pnand %p3089_p0, %p3088_p12  ;;  %p3096_p3 = scmp.lt.u32.totalorder %s3087_s20, %s3373_s16 }
  0x4d   : > { %p3095_p10 = por %p3094_p6, %p3093_p13 }
  0x4e   : > { %p3091_p1 = pneg %p3090_p2 }
  0x4f   : > { %p3097_p5 = por %p3096_p3, %p3095_p10 }
  0x51   : > { %p3098_p9 = pnand %p3097_p5, %p3091_p1 }
  0x53   : > { %3101 = shalt.err (!%p3098_p9)
}
  0x54   : > { %s3102_s8 = scalar_lea.vmem %s3375_s17, 1024  ;;  %s3195_s15 = smov [#allocation2]  }
  0x55   : > { %p3103_p12 = scmp.ne.s32.totalorder %s3375_s17, %s3102_s8  ;;  %s3107_s7 = sshll.u32 %s3195_s15, 4  ;;  %s3108_s7 = int_to_ptr.vmem [resolvable:$false] %s3107_s7 }
  0x56   : > { %s3109_s30 = scalar_lea.vmem %s3108_s7, 2048  ;;  %p3110_p4 = scmp.lt.s32.totalorder %s3375_s17, %s3108_s7 }
  0x57   : > { %p3105_p2 = pnand %p3103_p12, %p3089_p0  ;;  %p3111_p13 = scmp.lt.s32.totalorder %s3109_s30, %s3102_s8 }
  0x59   : > { %p3106_p7 = pneg %p3105_p2  ;;  %p3112_p6 = por %p3111_p13, %p3110_p4 }
  0x5b   : > { %p3113_p10 = pnand %p3112_p6, %p3106_p7 }
  0x5d   : > { %3116 = shalt.err (!%p3113_p10)
}
  0x5e   : > { %s3196_s20 = smov 128   ;;  %s3197_s9 = smov 8  }
  0x5f   : > { %2836 = dma.hbm_to_vmem [thread:$0]  (!%p3377_p11), %s3373_s16, 1024, %s3375_s17, %s3381_s19, %s3196_s20, %s3196_s20, %s3197_s9  }
  0x60   : > { %256 = sbr.rel (%p3280_p8) target bundleno = 2854 (0xb26), region = 44  ;;  %s3412_s13 = sand.u32 (!%p3280_p8), 1, %s3179_s22  }
  0x61   : > { %s2454_s10 = sshll.u32 (!%p3280_p8), %s3412_s13, 6  ;;  %s259_s14 = scalar_lea.sflag (!%p3280_p8), [#allocation3], %s3412_s13 }
  0x62   : > { %s3418_s8 = scalar_lea.vmem (!%p3280_p8), [#allocation2], %s2454_s10  ;;  %p4053_p4 = scmp.ne.s32.totalorder (!%p3280_p8), %s4046_s27, 0 }
  0x67   : > { %3162 = dma.done.wait (%p4053_p4), %s259_s14, 1024  }
  0x68   : > { %3164 = vsyncadd (%p4053_p4), %s259_s14, 4294966272  ;;  %p4054_p7 = scmp.eq.s32.totalorder %s3261_s25, 0 }
  0x6a   : > { %3166 = dma.done.wait (%p4054_p7), [#allocation6], 4096   ;;  %p4055_p8 = pmov %p4054_p7 }
  0x6b   : > { %v3198_v0 = vmov 0   ;;  %v2893_v1 = vld [vmem:[#allocation5 + $0x4] ss:$12 sps:$4 sm:$0xff]   ;;  %v2895_v2 = vld [vmem:[#allocation5] ss:$12 sps:$4 sm:$0xff]   ;;  %v303_v21 = vld [vmem:[%s3418_s8 + $0x18] sm:$0xff]  ;;  %v346_v37 = vlaneseq }
  0x6c   : > { %3168 = vsyncadd (%p4055_p8), [#allocation6], 4294963200  ;;  %521 = vmatprep.mubr.bf16.mxu0 %v3198_v0  ;;  %489 = vmatprep.subr.bf16.mxu0 %v2893_v1  ;;  %v2896_v3 = vld [vmem:[#allocation5 + $0x1c] ss:$12 sps:$4 sm:$0xff]   ;;  %v2898_v4 = vld [vmem:[#allocation5 + $0x18] ss:$12 sps:$4 sm:$0xff]  }
  0x6d   : > { %490 = vmatpush1.bf16.msra.mxu0 %v2895_v2  ;;  %v2899_v5 = vld [vmem:[#allocation5 + $0x34] ss:$12 sps:$4 sm:$0xff]   ;;  %v2901_v6 = vld [vmem:[#allocation5 + $0x30] ss:$12 sps:$4 sm:$0xff]   ;;  %v2902_v7 = vld [vmem:[#allocation5 + $0x4c] ss:$12 sps:$4 sm:$0xff]  }
  0x6e   : > { %491 = vmatprep.subr.bf16.mxu0 %v2896_v3  ;;  %v300_v8 = vld [vmem:[%s3418_s8] sm:$0xff]  ;;  %v2904_v9 = vld [vmem:[#allocation5 + $0x48] ss:$12 sps:$4 sm:$0xff]   ;;  %v2913_v17 = vld [vmem:[#allocation5 + $0x90] ss:$12 sps:$4 sm:$0xff]   ;;  %v3436_v38 = vshrl.u32 %v346_v37, 7 }
  0x6f   : > { %v301_v10 = vld [vmem:[%s3418_s8 + $0x8] sm:$0xff]  ;;  %v2905_v11 = vld [vmem:[#allocation5 + $0x64] ss:$12 sps:$4 sm:$0xff]   ;;  %v2911_v16 = vld [vmem:[#allocation5 + $0x94] ss:$12 sps:$4 sm:$0xff]   ;;  %vm1460_vm0 = vcmask 785920  }
  0x70   : > { %v308_v12 = vpack.c.bf16 %v301_v10, %v300_v8  ;;  %v2907_v13 = vld [vmem:[#allocation5 + $0x60] ss:$12 sps:$4 sm:$0xff]   ;;  %v2908_v14 = vld [vmem:[#allocation5 + $0x7c] ss:$12 sps:$4 sm:$0xff]   ;;  %v2910_v15 = vld [vmem:[#allocation5 + $0x78] ss:$12 sps:$4 sm:$0xff]  }
  0x71   : > { %492 = vmatpush1.bf16.msra.mxu0 %v2898_v4  ;;  %v2914_v18 = vld [vmem:[#allocation5 + $0xac] ss:$12 sps:$4 sm:$0xff]   ;;  %v2916_v19 = vld [vmem:[#allocation5 + $0xa8] ss:$12 sps:$4 sm:$0xff]   ;;  %v304_v23 = vld [vmem:[%s3418_s8 + $0x20] sm:$0xff]  ;;  %v348_v39 = vsub.s32 0, %v3436_v38 }
  0x72   : > { %493 = vmatprep.subr.bf16.mxu0 %v2899_v5  ;;  %2638 = vmatprep.mubr.bf16.mxu1 %v308_v12  ;;  %v302_v20 = vld [vmem:[%s3418_s8 + $0x10] sm:$0xff]  ;;  %v305_v24 = vld [vmem:[%s3418_s8 + $0x28] sm:$0xff]  ;;  %v307_v27 = vld [vmem:[%s3418_s8 + $0x38] sm:$0xff]  ;;  %v352_v41 = vsub.s32 1, %v3436_v38  ;;  %vm637_vm1 = vcmask 261120   ;;  %vm1888_vm2 = vcmask 1048320  }
  0x73   : > { %v309_v22 = vpack.c.bf16 %v303_v21, %v302_v20  ;;  %v310_v25 = vpack.c.bf16 %v305_v24, %v304_v23  ;;  %v306_v26 = vld [vmem:[%s3418_s8 + $0x30] sm:$0xff]  ;;  %v2918_v30 = vld [vmem:[#allocation5 + $0x20] ss:$12 sps:$4 sm:$0xff]   ;;  %v2919_v31 = vld [vmem:[#allocation5 + $0x38] ss:$12 sps:$4 sm:$0xff]   ;;  %vm947_vm3 = vcmask 523520  }
  0x74   : > { %v311_v28 = vpack.c.bf16 %v307_v27, %v306_v26  ;;  %v2917_v29 = vld [vmem:[#allocation5 + $0x8] ss:$12 sps:$4 sm:$0xff]   ;;  %v2920_v32 = vld [vmem:[#allocation5 + $0x50] ss:$12 sps:$4 sm:$0xff]   ;;  %v2922_v34 = vld [vmem:[#allocation5 + $0x80] ss:$12 sps:$4 sm:$0xff]  }
  0x75   : > { %494 = vmatpush1.bf16.msra.mxu0 %v2901_v6  ;;  %2622 = vmatprep.subr.bf16.mxu1 %v2917_v29  ;;  %v2921_v33 = vld [vmem:[#allocation5 + $0x68] ss:$12 sps:$4 sm:$0xff]   ;;  %v2923_v35 = vld [vmem:[#allocation5 + $0x98] ss:$12 sps:$4 sm:$0xff]   ;;  %v2924_v36 = vld [vmem:[#allocation5 + $0xb0] ss:$12 sps:$4 sm:$0xff]  }
  0x76   : > { %495 = vmatprep.subr.bf16.mxu0 %v2902_v7  ;;  %2623 = vmatpush3.bf16.msra.mxu1 %v2917_v29  ;;  %v3442_v40 = vld [vmem:[%s4038_s2] sm:$0x7]  ;;  %s3199_s16 = smov 96   ;;  %vm746_vm10 = vcmask 523264   ;;  %s3200_s17 = smov 64  }
  0x77   : > { %2624 = vmatprep.subr.bf16.mxu1 %v2918_v30  ;;  %v3448_v42 = vrot.slane %v3442_v40, %v348_v39  ;;  %v3451_v43 = vrot.slane %v3442_v40, %v352_v41  ;;  %s3201_s15 = smov 32   ;;  %s298_s20 = scalar_lea.vmem [#allocation8], %s2454_s10 }
  0x78   : > { %s2353_s9 = sshll.u32 %s298_s20, 4  ;;  %s2537_s14 = sshll.u32 %s3261_s25, 10  ;;  %s3987_s9 = int_to_ptr.vmem [resolvable:$true] %s2353_s9 }
  0x79   : > { %496 = vmatpush1.bf16.msra.mxu0 %v2904_v9  ;;  %s3992_s27 = scalar_lea.hbm %s4042_s6, %s2537_s14  ;;  %s2340_s25 = scalar_lea.sflag [#allocation4], %s3412_s13 }
  0x7a   : > { %497 = vmatprep.subr.bf16.mxu0 %v2905_v11  ;;  %2625 = vmatpush3.bf16.msra.mxu1 %v2918_v30  ;;  %s3117_s29 = scalar_lea.vmem %s3987_s9, 1024  ;;  %p4056_p0 = scmp.ne.s32.totalorder %s4051_s12, 0 }
  0x7b   : > { %2626 = vmatprep.subr.bf16.mxu1 %v2919_v31  ;;  %p3118_p11 = scmp.ne.s32.totalorder %s3987_s9, %s3117_s29 }
  0x7d   : > { %498 = vmatpush1.bf16.msra.mxu0 %v2907_v13  ;;  %p3119_p1 = pnand %p3118_p11, %p4056_p0 }
  0x7e   : > { %499 = vmatprep.subr.bf16.mxu0 %v2908_v14  ;;  %2627 = vmatpush3.bf16.msra.mxu1 %v2919_v31 }
  0x7f   : > { %2628 = vmatprep.subr.bf16.mxu1 %v2920_v32  ;;  %p3120_p3 = pneg %p3119_p1 }
  0x81   : > { %500 = vmatpush1.bf16.msra.mxu0 %v2910_v15 }
  0x82   : > { %501 = vmatprep.subr.bf16.mxu0 %v2911_v16  ;;  %2629 = vmatpush3.bf16.msra.mxu1 %v2920_v32 }
  0x83   : > { %2630 = vmatprep.subr.bf16.mxu1 %v2921_v33 }
  0x85   : > { %502 = vmatpush1.bf16.msra.mxu0 %v2913_v17 }
  0x86   : > { %503 = vmatprep.subr.bf16.mxu0 %v2914_v18  ;;  %2631 = vmatpush3.bf16.msra.mxu1 %v2921_v33 }
  0x87   : > { %2632 = vmatprep.subr.bf16.mxu1 %v2922_v34 }
  0x89   : > { %504 = vmatpush1.bf16.msra.mxu0 %v2916_v19 }
  0x8a   : > { %2633 = vmatpush3.bf16.msra.mxu1 %v2922_v34 }
  0x8b   : > { %2634 = vmatprep.subr.bf16.mxu1 %v2923_v35 }
  0x8c   : > { %522 = vmatmul.mubr.bf16.vlgmr.msra.gmra.mrb[0].mxu0 %v308_v12 }
  0x8d   : > { %531 = vmatprep.mubr.bf16.mxu0 %v3198_v0 }
  0x8e   : > { %2635 = vmatpush3.bf16.msra.mxu1 %v2923_v35 }
  0x8f   : > { %2636 = vmatprep.subr.bf16.mxu1 %v2924_v36 }
  0x92   : > { %2637 = vmatpush3.bf16.msra.mxu1 %v2924_v36 }
  0x94   : > { %532 = vmatmul.mubr.bf16.gmra.mrb[4].mxu0 %v309_v22 }
  0x95   : > { %541 = vmatprep.mubr.bf16.mxu0 %v3198_v0  ;;  %2639 = vmatmul.mubr.bf16.vlgmr.msra.gmra.mrb[0].mxu1 %v309_v22 }
  0x96   : > { %2642 = vmatprep.mubr.bf16.mxu1 %v310_v25 }
  0x9c   : > { %542 = vmatmul.mubr.bf16.gmra.mrb[8].mxu0 %v310_v25 }
  0x9d   : > { %551 = vmatprep.mubr.bf16.mxu0 %v3198_v0  ;;  %2643 = vmatmul.mubr.bf16.gmra.mrb[4].mxu1 %v311_v28 }
  0xa4   : > { %552 = vmatmul.mubr.bf16.gmra.mrb[12].mxu0 %v311_v28 }
 0x15f   : > { %v523_v44 = vpop.f32.mrb[0].mxu0 }
 0x160   : > { %v3454_v45 = vadd.f32 %v523_v44, %v3448_v42  ;;  %v525_v46 = vpop.f32.mrb[1].mxu0 }
 0x161   : > { %v3457_v47 = vadd.f32 %v525_v46, %v3451_v43  ;;  %v527_v48 = vpop.f32.mrb[2].mxu0 }
 0x162   : > { %v3460_v49 = vadd.f32 %v527_v48, %v3448_v42  ;;  %v529_v50 = vpop.f32.mrb[3].mxu0  ;;  %v629_v51 = vmul.f32 %v3454_v45, %v3454_v45 }
 0x163   : > { %v667_v52 = vmul.f32 %v3457_v47, %v3457_v47  ;;  %v3467_v53 = vadd.f32 %v529_v50, %v3451_v43 }
 0x164   : > { %v630_v55 = vmul.f32 %v3460_v49, %v3460_v49  ;;  %v638_v57 = vsel %vm637_vm1, %v629_v51, 0.0  ;;  %v1461_v58 = vsel %vm1460_vm0, %v629_v51, 0.0  ;;  %v1889_v60 = vsel %vm1888_vm2, %v629_v51, 0.0 }
 0x165   : > { %v1490_v54 = vsel %vm1460_vm0, %v667_v52, 0.0  ;;  %v668_v56 = vmul.f32 %v3467_v53, %v3467_v53  ;;  %v1918_v5 = vsel %vm1888_vm2, %v667_v52, 0.0  ;;  %v948_v16 = vsel %vm947_vm3, %v629_v51, 0.0 }
 0x166   : > { %v639_v61 = vsel %vm637_vm1, %v630_v55, 0.0  ;;  %v1462_v62 = vsel %vm1460_vm0, %v630_v55, 0.0  ;;  %v1890_v63 = vsel %vm1888_vm2, %v630_v55, 0.0  ;;  %v949_v9 = vsel %vm947_vm3, %v630_v55, 0.0 }
 0x167   : > { %v533_v59 = vpop.f32.mrb[4].mxu0  ;;  %v640_v1 = vadd.f32 %v639_v61, %v638_v57  ;;  %v1463_v2 = vadd.f32 %v1462_v62, %v1461_v58  ;;  %v1891_v3 = vadd.f32 %v1890_v63, %v1889_v60  ;;  %v1491_v6 = vsel %vm1460_vm0, %v668_v56, 0.0 }
 0x168   : > { %v535_v0 = vpop.f32.mrb[5].mxu0  ;;  %v1919_v7 = vsel %vm1888_vm2, %v668_v56, 0.0  ;;  %v1492_v10 = vadd.f32 %v1491_v6, %v1490_v54  ;;  %v676_v12 = vsel %vm637_vm1, %v668_v56, 0.0  ;;  %v3486_v13 = vadd.f32 %v533_v59, %v3448_v42 }
 0x169   : > { %v537_v4 = vpop.f32.mrb[6].mxu0  ;;  %v1920_v11 = vadd.f32 %v1919_v7, %v1918_v5  ;;  %v3489_v14 = vadd.f32 %v535_v0, %v3451_v43  ;;  %v675_v17 = vsel %vm637_vm1, %v667_v52, 0.0  ;;  %v977_v21 = vsel %vm947_vm3, %v667_v52, 0.0 }
 0x16a   : > { %v539_v8 = vpop.f32.mrb[7].mxu0  ;;  %v3492_v15 = vadd.f32 %v537_v4, %v3448_v42  ;;  %v631_v18 = vmul.f32 %v3486_v13, %v3486_v13  ;;  %v950_v22 = vadd.f32 %v949_v9, %v948_v16  ;;  %v677_v23 = vadd.f32 %v676_v12, %v675_v17 }
 0x16b   : > { %v669_v19 = vmul.f32 %v3489_v14, %v3489_v14  ;;  %v3501_v20 = vadd.f32 %v539_v8, %v3451_v43  ;;  %v978_v24 = vsel %vm947_vm3, %v668_v56, 0.0 }
 0x16c   : > { %v641_v26 = vsel %vm637_vm1, %v631_v18, 0.0  ;;  %v1464_v27 = vsel %vm1460_vm0, %v631_v18, 0.0  ;;  %v1892_v28 = vsel %vm1888_vm2, %v631_v18, 0.0  ;;  %v632_v29 = vmul.f32 %v3492_v15, %v3492_v15 }
 0x16d   : > { %v642_v31 = vadd.f32 %v641_v26, %v640_v1  ;;  %v951_v32 = vsel %vm947_vm3, %v631_v18, 0.0  ;;  %v1465_v33 = vadd.f32 %v1464_v27, %v1463_v2  ;;  %v1893_v34 = vadd.f32 %v1892_v28, %v1891_v3 }
 0x16e   : > { %v678_v36 = vsel %vm637_vm1, %v669_v19, 0.0  ;;  %v1493_v37 = vsel %vm1460_vm0, %v669_v19, 0.0  ;;  %v1921_v41 = vsel %vm1888_vm2, %v669_v19, 0.0  ;;  %v670_v44 = vmul.f32 %v3501_v20, %v3501_v20 }
 0x16f   : > { %v543_v25 = vpop.f32.mrb[8].mxu0  ;;  %v979_v48 = vadd.f32 %v978_v24, %v977_v21  ;;  %v980_v50 = vsel %vm947_vm3, %v669_v19, 0.0  ;;  %v1494_v51 = vadd.f32 %v1493_v37, %v1492_v10  ;;  %v1922_v52 = vadd.f32 %v1921_v41, %v1920_v11 }
 0x170   : > { %v545_v30 = vpop.f32.mrb[9].mxu0  ;;  %v952_v54 = vadd.f32 %v951_v32, %v950_v22  ;;  %v643_v55 = vsel %vm637_vm1, %v632_v29, 0.0  ;;  %v1466_v56 = vsel %vm1460_vm0, %v632_v29, 0.0  ;;  %v1894_v57 = vsel %vm1888_vm2, %v632_v29, 0.0 }
 0x171   : > { %v547_v35 = vpop.f32.mrb[10].mxu0  ;;  %v679_v58 = vadd.f32 %v678_v36, %v677_v23  ;;  %v644_v59 = vadd.f32 %v643_v55, %v642_v31  ;;  %v1467_v60 = vadd.f32 %v1466_v56, %v1465_v33  ;;  %v1895_v61 = vadd.f32 %v1894_v57, %v1893_v34 }
 0x172   : > { %v549_v46 = vpop.f32.mrb[11].mxu0  ;;  %v981_v62 = vadd.f32 %v980_v50, %v979_v48  ;;  %v953_v63 = vsel %vm947_vm3, %v632_v29, 0.0  ;;  %v1495_v0 = vsel %vm1460_vm0, %v670_v44, 0.0  ;;  %v1923_v1 = vsel %vm1888_vm2, %v670_v44, 0.0 }
 0x173   : > { %v680_v2 = vsel %vm637_vm1, %v670_v44, 0.0  ;;  %v982_v3 = vsel %vm947_vm3, %v670_v44, 0.0  ;;  %v1496_v4 = vadd.f32 %v1495_v0, %v1494_v51  ;;  %v1924_v5 = vadd.f32 %v1923_v1, %v1922_v52 }
 0x174   : > { %v3526_v7 = vadd.f32 %v543_v25, %v3448_v42  ;;  %v3529_v8 = vadd.f32 %v545_v30, %v3451_v43  ;;  %v3532_v9 = vadd.f32 %v547_v35, %v3448_v42  ;;  %v3535_v10 = vadd.f32 %v549_v46, %v3451_v43 }
 0x175   : > { %v954_v12 = vadd.f32 %v953_v63, %v952_v54  ;;  %v681_v19 = vadd.f32 %v680_v2, %v679_v58  ;;  %v983_v21 = vadd.f32 %v982_v3, %v981_v62 }
 0x176   : > { %v633_v22 = vmul.f32 %v3526_v7, %v3526_v7  ;;  %v671_v23 = vmul.f32 %v3529_v8, %v3529_v8  ;;  %v634_v25 = vmul.f32 %v3532_v9, %v3532_v9  ;;  %v672_v26 = vmul.f32 %v3535_v10, %v3535_v10 }
 0x177   : > { %v553_v6 = vpop.f32.mrb[12].mxu0 }
 0x178   : > { %v555_v11 = vpop.f32.mrb[13].mxu0  ;;  %v3538_v16 = vadd.f32 %v553_v6, %v3448_v42  ;;  %v645_v29 = vsel %vm637_vm1, %v633_v22, 0.0  ;;  %v955_v30 = vsel %vm947_vm3, %v633_v22, 0.0  ;;  %v1468_v31 = vsel %vm1460_vm0, %v633_v22, 0.0 }
 0x179   : > { %v3541_v17 = vadd.f32 %v555_v11, %v3451_v43  ;;  %v557_v18 = vpop.f32.mrb[14].mxu0  ;;  %v1896_v32 = vsel %vm1888_vm2, %v633_v22, 0.0  ;;  %v646_v33 = vadd.f32 %v645_v29, %v644_v59  ;;  %v1469_v34 = vadd.f32 %v1468_v31, %v1467_v60 }
 0x17a   : > { %v559_v24 = vpop.f32.mrb[15].mxu0  ;;  %v635_v27 = vmul.f32 %v3538_v16, %v3538_v16  ;;  %v1897_v35 = vadd.f32 %v1896_v32, %v1895_v61  ;;  %v3560_v36 = vadd.f32 %v557_v18, %v3448_v42  ;;  %v682_v37 = vsel %vm637_vm1, %v671_v23, 0.0 }
 0x17b   : > { %v673_v28 = vmul.f32 %v3541_v17, %v3541_v17  ;;  %v1497_v41 = vsel %vm1460_vm0, %v671_v23, 0.0  ;;  %v1925_v44 = vsel %vm1888_vm2, %v671_v23, 0.0  ;;  %v3566_v46 = vadd.f32 %v559_v24, %v3451_v43 }
 0x17c   : > { %v956_v48 = vadd.f32 %v955_v30, %v954_v12  ;;  %v984_v50 = vsel %vm947_vm3, %v671_v23, 0.0  ;;  %v1498_v51 = vadd.f32 %v1497_v41, %v1496_v4  ;;  %v1926_v52 = vadd.f32 %v1925_v44, %v1924_v5 }
 0x17d   : > { %v647_v54 = vsel %vm637_vm1, %v634_v25, 0.0  ;;  %v957_v55 = vsel %vm947_vm3, %v634_v25, 0.0  ;;  %v1470_v42 = vsel %vm1460_vm0, %v634_v25, 0.0  ;;  %v1898_v56 = vsel %vm1888_vm2, %v634_v25, 0.0 }
 0x17e   : > { %v683_v57 = vadd.f32 %v682_v37, %v681_v19  ;;  %v648_v58 = vadd.f32 %v647_v54, %v646_v33  ;;  %v1471_v59 = vadd.f32 %v1470_v42, %v1469_v34  ;;  %v1899_v60 = vadd.f32 %v1898_v56, %v1897_v35 }
 0x17f   : > { %v985_v61 = vadd.f32 %v984_v50, %v983_v21  ;;  %v684_v43 = vsel %vm637_vm1, %v672_v26, 0.0  ;;  %v1499_v62 = vsel %vm1460_vm0, %v672_v26, 0.0  ;;  %v1927_v63 = vsel %vm1888_vm2, %v672_v26, 0.0 }
 0x180   : > { %v958_v0 = vadd.f32 %v957_v55, %v956_v48  ;;  %v986_v1 = vsel %vm947_vm3, %v672_v26, 0.0  ;;  %v1500_v2 = vadd.f32 %v1499_v62, %v1498_v51  ;;  %v1928_v3 = vadd.f32 %v1927_v63, %v1926_v52 }
 0x181   : > { %v649_v4 = vsel %vm637_vm1, %v635_v27, 0.0  ;;  %v959_v5 = vsel %vm947_vm3, %v635_v27, 0.0  ;;  %v1472_v6 = vsel %vm1460_vm0, %v635_v27, 0.0  ;;  %v1900_v11 = vsel %vm1888_vm2, %v635_v27, 0.0 }
 0x182   : > { %v685_v12 = vadd.f32 %v684_v43, %v683_v57  ;;  %v650_v18 = vadd.f32 %v649_v4, %v648_v58  ;;  %v1473_v19 = vadd.f32 %v1472_v6, %v1471_v59  ;;  %v1901_v21 = vadd.f32 %v1900_v11, %v1899_v60 }
 0x183   : > { %v686_v22 = vsel %vm637_vm1, %v673_v28, 0.0  ;;  %v988_v23 = vsel %vm947_vm3, %v673_v28, 0.0  ;;  %v1501_v24 = vsel %vm1460_vm0, %v673_v28, 0.0  ;;  %v1929_v25 = vsel %vm1888_vm2, %v673_v28, 0.0 }
 0x184   : > { %v987_v26 = vadd.f32 %v986_v1, %v985_v61  ;;  %v960_v29 = vadd.f32 %v959_v5, %v958_v0  ;;  %v1502_v30 = vadd.f32 %v1501_v24, %v1500_v2  ;;  %v1930_v31 = vadd.f32 %v1929_v25, %v1928_v3 }
 0x185   : > { %v636_v32 = vmul.f32 %v3560_v36, %v3560_v36  ;;  %v674_v27 = vmul.f32 %v3566_v46, %v3566_v46  ;;  %v687_v33 = vadd.f32 %v686_v22, %v685_v12 }
 0x186   : > { %v989_v34 = vadd.f32 %v988_v23, %v987_v26 }
 0x187   : > { %v651_v35 = vsel %vm637_vm1, %v636_v32, 0.0  ;;  %v961_v37 = vsel %vm947_vm3, %v636_v32, 0.0  ;;  %v1474_v41 = vsel %vm1460_vm0, %v636_v32, 0.0  ;;  %v1902_v28 = vsel %vm1888_vm2, %v636_v32, 0.0 }
 0x188   : > { %v3593_v44 = vadd.f32 %v651_v35, %v650_v18  ;;  %v962_v48 = vadd.f32 %v961_v37, %v960_v29  ;;  %v3595_v50 = vadd.f32 %v1474_v41, %v1473_v19  ;;  %v3597_v51 = vadd.f32 %v1902_v28, %v1901_v21 }
 0x189   : > { %v688_v52 = vsel %vm637_vm1, %v674_v27, 0.0  ;;  %v990_v54 = vsel %vm947_vm3, %v674_v27, 0.0  ;;  %v1503_v55 = vsel %vm1460_vm0, %v674_v27, 0.0  ;;  %v1931_v42 = vsel %vm1888_vm2, %v674_v27, 0.0 }
 0x18a   : > { %v963_v56 = vrot.slane %v962_v48, 4  ;;  %v689_v57 = vadd.f32 %v688_v52, %v687_v33  ;;  %v991_v58 = vadd.f32 %v990_v54, %v989_v34  ;;  %v3603_v59 = vadd.f32 %v1503_v55, %v1502_v30 }
 0x18b   : > { %v3605_v60 = vadd.f32 %v1931_v42, %v1930_v31 }
 0x18c   : > { %v964_v61 = vadd.f32 %v963_v56, %v962_v48  ;;  %v690_v43 = vrot.slane %v689_v57, 4  ;;  %v992_v62 = vrot.slane %v991_v58, 4 }
 0x18e   : > { %v965_v63 = vrot.slane %v964_v61, 2  ;;  %v691_v0 = vadd.f32 %v690_v43, %v689_v57  ;;  %v993_v1 = vadd.f32 %v992_v62, %v991_v58 }
 0x190   : > { %v966_v2 = vadd.f32 %v965_v63, %v964_v61  ;;  %v692_v3 = vrot.slane %v691_v0, 2  ;;  %v994_v4 = vrot.slane %v993_v1, 2 }
 0x192   : > { %v967_v5 = vrot.slane %v966_v2, 1  ;;  %v693_v6 = vadd.f32 %v692_v3, %v691_v0  ;;  %v995_v11 = vadd.f32 %v994_v4, %v993_v1 }
 0x194   : > { %v968_v12 = vadd.f32 %v967_v5, %v966_v2  ;;  %v694_v18 = vrot.slane %v693_v6, 1  ;;  %v996_v19 = vrot.slane %v995_v11, 1 }
 0x196   : > { %2933 = vrsqrt.f32 %v968_v12  ;;  %v695_v21 = vadd.f32 %v694_v18, %v693_v6  ;;  %v997_v22 = vadd.f32 %v996_v19, %v995_v11  ;;  %vm971_vm4 = vcmp.eq.f32.partialorder %v968_v12, inf }
 0x197   : > { %v974_v25 = vand.u32 2147483648, %v968_v12  ;;  %vm973_vm5 = vcmp.eq.f32.partialorder %v968_v12, 0.0 }
 0x198   : > { %2935 = vrsqrt.f32 %v695_v21  ;;  %vm698_vm6 = vcmp.eq.f32.partialorder %v695_v21, inf  ;;  %v701_v33 = vand.u32 2147483648, %v695_v21  ;;  %vm700_vm7 = vcmp.eq.f32.partialorder %v695_v21, 0.0 }
 0x199   : > { %2937 = vrsqrt.f32 %v997_v22  ;;  %vm1000_vm8 = vcmp.eq.f32.partialorder %v997_v22, inf  ;;  %v1003_v37 = vand.u32 2147483648, %v997_v22  ;;  %vm1002_vm9 = vcmp.eq.f32.partialorder %v997_v22, 0.0 }
 0x1a0   : > { %v2934_v23 = vpop.eup %2933 }
 0x1a1   : > { %v970_v24 = vmul.f32 %v2934_v23, %v968_v12 }
 0x1a2   : > { %v2936_v30 = vpop.eup %2935 }
 0x1a3   : > { %v972_v26 = vsel %vm971_vm4, %v968_v12, %v970_v24  ;;  %v2938_v32 = vpop.eup %2937  ;;  %v697_v27 = vmul.f32 %v2936_v30, %v695_v21 }
 0x1a4   : > { %v975_v29 = vsel %vm973_vm5, %v974_v25, %v972_v26  ;;  %v999_v34 = vmul.f32 %v2938_v32, %v997_v22 }
 0x1a5   : > { %v976_v31 = vmax.f32 %v975_v29, 1e-12  ;;  %v699_v35 = vsel %vm698_vm6, %v695_v21, %v697_v27 }
 0x1a6   : > { %v702_v41 = vsel %vm700_vm7, %v701_v33, %v699_v35  ;;  %v1001_v28 = vsel %vm1000_vm8, %v997_v22, %v999_v34 }
 0x1a7   : > { %2939 = vrcp.f32 %v976_v31  ;;  %v703_v48 = vmax.f32 %v702_v41, 1e-12  ;;  %v1004_v52 = vsel %vm1002_vm9, %v1003_v37, %v1001_v28 }
 0x1a8   : > { %v1005_v54 = vmax.f32 %v1004_v52, 1e-12 }
 0x1a9   : > { %2941 = vrcp.f32 %v703_v48 }
 0x1aa   : > { %2943 = vrcp.f32 %v1005_v54 }
 0x1b1   : > { %v2940_v55 = vpop.eup %2939 }
 0x1b2   : > { %v1011_v42 = vmul.f32 %v2940_v55, %v3526_v7  ;;  %v1012_v56 = vmul.f32 %v2940_v55, %v3532_v9  ;;  %v1007_v57 = vmul.f32 %v2940_v55, %v3454_v45  ;;  %v1008_v58 = vmul.f32 %v2940_v55, %v3460_v49 }
 0x1b3   : > { %v1013_v61 = vmul.f32 %v2940_v55, %v3538_v16  ;;  %v1014_v43 = vmul.f32 %v2940_v55, %v3560_v36  ;;  %v1009_v0 = vmul.f32 %v2940_v55, %v3486_v13  ;;  %v1010_v1 = vmul.f32 %v2940_v55, %v3492_v15  ;;  %v2942_v2 = vpop.eup %2941 }
 0x1b4   : > { %v1026_v62 = vpack.c.bf16 %v1012_v56, %v1011_v42  ;;  %v1024_v63 = vpack.c.bf16 %v1008_v58, %v1007_v57  ;;  %v2944_v3 = vpop.eup %2943  ;;  %v714_v4 = vmul.f32 %v2942_v2, %v3457_v47  ;;  %v715_v5 = vmul.f32 %v2942_v2, %v3467_v53 }
 0x1b5   : > { %v716_v6 = vmul.f32 %v2942_v2, %v3489_v14  ;;  %v717_v11 = vmul.f32 %v2942_v2, %v3501_v20  ;;  %v1027_v12 = vpack.c.bf16 %v1014_v43, %v1013_v61  ;;  %v1025_v18 = vpack.c.bf16 %v1010_v1, %v1009_v0 }
 0x1b6   : > { %1040 = vrot.lane.b32.xlu1 %v1026_v62, %s3199_s16  ;;  %1036 = vrot.lane.b32.xlu0 %v1024_v63, %s3199_s16  ;;  %v1018_v19 = vmul.f32 %v2944_v3, %v3489_v14  ;;  %v1019_v21 = vmul.f32 %v2944_v3, %v3501_v20  ;;  %v726_v22 = vpack.c.bf16 %v715_v5, %v714_v4  ;;  %v1476_v0 = vrot.slane %v3595_v50, 4 }
 0x1b7   : > { %v1016_v23 = vmul.f32 %v2944_v3, %v3457_v47  ;;  %v1017_v24 = vmul.f32 %v2944_v3, %v3467_v53  ;;  %v718_v25 = vmul.f32 %v2942_v2, %v3529_v8  ;;  %v727_v26 = vpack.c.bf16 %v717_v11, %v716_v6 }
 0x1b8   : > { %2646 = vmatprep.subr.bf16.mxu1 %v726_v22  ;;  %v719_v29 = vmul.f32 %v2942_v2, %v3535_v10  ;;  %v1029_v30 = vpack.c.bf16 %v1019_v21, %v1018_v19  ;;  %v1022_v32 = vmul.f32 %v2944_v3, %v3541_v17  ;;  %v1023_v27 = vmul.f32 %v2944_v3, %v3566_v46 }
 0x1b9   : > { %v1028_v31 = vpack.c.bf16 %v1017_v24, %v1016_v23  ;;  %2647 = vmatpush3.bf16.msra.mxu1 %v726_v22  ;;  %v1020_v33 = vmul.f32 %v2944_v3, %v3529_v8  ;;  %v1021_v34 = vmul.f32 %v2944_v3, %v3535_v10  ;;  %v720_v37 = vmul.f32 %v2942_v2, %v3541_v17 }
 0x1ba   : > { %1042 = vrot.lane.b32.xlu1 %v1027_v12, %s3199_s16  ;;  %1038 = vrot.lane.b32.xlu0 %v1025_v18, %s3199_s16  ;;  %v728_v35 = vpack.c.bf16 %v719_v29, %v718_v25  ;;  %v721_v41 = vmul.f32 %v2942_v2, %v3566_v46  ;;  %v1031_v28 = vpack.c.bf16 %v1023_v27, %v1022_v32 }
 0x1bb   : > { %2648 = vmatprep.subr.bf16.mxu1 %v727_v26  ;;  %v1030_v48 = vpack.c.bf16 %v1021_v34, %v1020_v33  ;;  %v1477_v1 = vadd.f32 %v1476_v0, %v3595_v50 }
 0x1bc   : > { %v729_v52 = vpack.c.bf16 %v721_v41, %v720_v37 }
 0x1bd   : > { %2649 = vmatpush3.bf16.msra.mxu1 %v727_v26  ;;  %v1478_v2 = vrot.slane %v1477_v1, 2 }
 0x1be   : > { %1070 = vrot.lane.b32.xlu1 %v1029_v30, %s3199_s16  ;;  %1068 = vrot.lane.b32.xlu0 %v1028_v31, %s3199_s16 }
 0x1bf   : > { %2650 = vmatprep.subr.bf16.mxu1 %v728_v35  ;;  %v1479_v3 = vadd.f32 %v1478_v2, %v1477_v1 }
 0x1c1   : > { %2651 = vmatpush3.bf16.msra.mxu1 %v728_v35  ;;  %v1480_v4 = vrot.slane %v1479_v3, 1 }
 0x1c2   : > { %1074 = vrot.lane.b32.xlu1 %v1031_v28, %s3199_s16  ;;  %1072 = vrot.lane.b32.xlu0 %v1030_v48, %s3199_s16 }
 0x1c3   : > { %2652 = vmatprep.subr.bf16.mxu1 %v729_v52  ;;  %v1481_v5 = vadd.f32 %v1480_v4, %v1479_v3 }
 0x1c5   : > { %2653 = vmatpush3.bf16.msra.mxu1 %v729_v52  ;;  %2945 = vrsqrt.f32 %v1481_v5  ;;  %vm1484_vm11 = vcmp.eq.f32.partialorder %v1481_v5, inf  ;;  %v1487_v18 = vand.u32 2147483648, %v1481_v5  ;;  %vm1486_vm12 = vcmp.eq.f32.partialorder %v1481_v5, 0.0 }
 0x1c6   : > { %v356_v52 = vsub.s32 2, %v3436_v38 }
 0x1cf   : > { %v2946_v6 = vpop.eup %2945 }
 0x1d0   : > { %v1483_v11 = vmul.f32 %v2946_v6, %v1481_v5 }
 0x1d2   : > { %v1485_v12 = vsel %vm1484_vm11, %v1481_v5, %v1483_v11 }
 0x1d3   : > { %v1488_v19 = vsel %vm1486_vm12, %v1487_v18, %v1485_v12 }
 0x1d4   : > { %v1489_v24 = vmax.f32 %v1488_v19, 1e-12  ;;  %v1505_v19 = vrot.slane %v3603_v59, 4 }
 0x1d6   : > { %2947 = vrcp.f32 %v1489_v24 }
 0x1e0   : > { %v3656_v31 = vpop.eup %2947 }
 0x1e1   : > { %v1522_v32 = vmul.f32 %v3656_v31, %v3486_v13  ;;  %v1523_v27 = vmul.f32 %v3656_v31, %v3492_v15  ;;  %v1520_v33 = vmul.f32 %v3656_v31, %v3454_v45  ;;  %v1521_v34 = vmul.f32 %v3656_v31, %v3460_v49 }
 0x1e2   : > { %v1524_v41 = vmul.f32 %v3656_v31, %v3526_v7  ;;  %v1525_v28 = vmul.f32 %v3656_v31, %v3532_v9 }
 0x1e3   : > { %v1538_v35 = vpack.c.bf16 %v1523_v27, %v1522_v32  ;;  %v1537_v37 = vpack.c.bf16 %v1521_v34, %v1520_v33 }
 0x1e4   : > { %v1539_v48 = vpack.c.bf16 %v1525_v28, %v1524_v41 }
 0x228   : > { %v1041_v54 = vpop.permute.xlu1 %1040  ;;  %v1037_v55 = vpop.permute.xlu0 %1036 }
 0x229   : > { %1048 = vxpose.xlu0.c.b16.start [1/4] (short) (narrow) %v1037_v55, 32 }
 0x22c   : > { %v1043_v42 = vpop.permute.xlu1 %1042  ;;  %v1039_v56 = vpop.permute.xlu0 %1038 }
 0x22d   : > { %1049 = vxpose.xlu0.c.b16.cont [2/4] (short) (narrow) %v1039_v56, 32 }
 0x230   : > { %v1069_v57 = vpop.permute.xlu0 %1068  ;;  %v1071_v58 = vpop.permute.xlu1 %1070 }
 0x231   : > { %1050 = vxpose.xlu0.c.b16.cont [3/4] (short) (narrow) %v1041_v54, 32  ;;  %2670 = vmatprep.subr.bf16.mxu0 %v1069_v57  ;;  %v2640_v54 = vpop.f32.mrb[0].mxu1 }
 0x232   : > { %2671 = vmatpush3.bf16.msra.mxu0 %v1069_v57  ;;  %v596_v55 = vpop.f32.mrb[1].mxu1 }
 0x233   : > { %2672 = vmatprep.subr.bf16.mxu0 %v1071_v58 }
 0x234   : > { %v1073_v61 = vpop.permute.xlu0 %1072  ;;  %v1075_v43 = vpop.permute.xlu1 %1074 }
 0x235   : > { %1051 = vxpose.xlu0.c.b16.end [4/4] (short) (narrow) %v1043_v42, 32  ;;  %v357_v42 = vrot.slane %v3442_v40, %v356_v52 }
 0x236   : > { %2673 = vmatpush3.bf16.msra.mxu0 %v1071_v58  ;;  %v2641_v58 = vpop.f32.mrb[2].mxu1 }
 0x237   : > { %2674 = vmatprep.subr.bf16.mxu0 %v1073_v61  ;;  %v605_v56 = vadd.f32 %v2640_v54, %v357_v42  ;;  %v597_v57 = vadd.f32 %v596_v55, %v357_v42 }
 0x23a   : > { %2675 = vmatpush3.bf16.msra.mxu0 %v1073_v61  ;;  %v608_v61 = vadd.f32 %v2641_v58, %v357_v42 }
 0x23b   : > { %2676 = vmatprep.subr.bf16.mxu0 %v1075_v43 }
 0x23c   : > { %v3675_v0 = vpack.c.bf16 %v608_v61, %v605_v56 }
 0x23e   : > { %2677 = vmatpush3.bf16.msra.mxu0 %v1075_v43  ;;  %v599_v43 = vpop.f32.mrb[3].mxu1 }
 0x28f   : > { %v1056_v62 = vpop.trf.xlu0 }
 0x290   : > { %2678 = vmatprep.mubr.msk.bf16.mxu0 %vm746_vm10, %v1056_v62  ;;  %v600_v62 = vadd.f32 %v599_v43, %v357_v42 }
 0x292   : > { %v3677_v1 = vpack.c.bf16 %v600_v62, %v597_v57 }
 0x293   : > { %v1057_v63 = vpop.trf.xlu0 }
 0x294   : > { %2679 = vmatmul.mubr.msk.bf16.vlgmr.msra.gmra.mrb[16].mxu0 %vm746_vm10, %v1057_v63  ;;  %v2644_v63 = vpop.f32.mrb[4].mxu1 }
 0x295   : > { %v621_v2 = vadd.f32 %v2644_v63, %v357_v42  ;;  %v612_v3 = vpop.f32.mrb[5].mxu1 }
 0x296   : > { %v613_v4 = vadd.f32 %v612_v3, %v357_v42  ;;  %v2645_v5 = vpop.f32.mrb[6].mxu1 }
 0x297   : > { %v624_v6 = vadd.f32 %v2645_v5, %v357_v42  ;;  %v615_v11 = vpop.f32.mrb[7].mxu1 }
 0x298   : > { %v616_v12 = vadd.f32 %v615_v11, %v357_v42  ;;  %v1526_v11 = vmul.f32 %v3656_v31, %v3538_v16 }
 0x299   : > { %v3679_v18 = vpack.c.bf16 %v624_v6, %v621_v2 }
 0x29a   : > { %v3681_v40 = vpack.c.bf16 %v616_v12, %v613_v4  ;;  %v1527_v12 = vmul.f32 %v3656_v31, %v3560_v36 }
 0x367   : > { %v3643_v21 = vpop.f32.mrb[16].mxu0 }
 0x368   : > { %v3645_v22 = vpop.f32.mrb[17].mxu0  ;;  %v1141_v30 = vsel %vm637_vm1, %v3643_v21, -inf }
 0x369   : > { %v2681_v23 = vpop.f32.mrb[18].mxu0  ;;  %v1135_v50 = vsel %vm637_vm1, %v3645_v22, -inf }
 0x36a   : > { %1136 = vmax.xlane.f32.xlu1 %v1135_v50  ;;  %v3649_v25 = vpop.f32.mrb[19].mxu0  ;;  %v1144_v26 = vsel %vm637_vm1, %v2681_v23, -inf  ;;  %v1506_v50 = vadd.f32 %v1505_v19, %v3603_v59 }
 0x36b   : > { %1145 = vmax.xlane.f32.xlu0 %v1144_v26  ;;  %v1138_v29 = vsel %vm637_vm1, %v3649_v25, -inf }
 0x36c   : > { %v1507_v24 = vrot.slane %v1506_v50, 2 }
 0x36e   : > { %1139 = vmax.xlane.f32.xlu1 %v1138_v29  ;;  %v1508_v26 = vadd.f32 %v1507_v24, %v1506_v50  ;;  %v1540_v24 = vpack.c.bf16 %v1527_v12, %v1526_v11 }
 0x370   : > { %v1509_v29 = vrot.slane %v1508_v26, 1 }
 0x372   : > { %1142 = vmax.xlane.f32.xlu1 %v1141_v30  ;;  %v1510_v30 = vadd.f32 %v1509_v29, %v1508_v26 }
 0x374   : > { %2949 = vrsqrt.f32 %v1510_v30  ;;  %vm1513_vm13 = vcmp.eq.f32.partialorder %v1510_v30, inf  ;;  %v1516_v57 = vand.u32 2147483648, %v1510_v30  ;;  %vm1515_vm14 = vcmp.eq.f32.partialorder %v1510_v30, 0.0 }
 0x37e   : > { %v2950_v41 = vpop.eup %2949 }
 0x37f   : > { %v1512_v52 = vmul.f32 %v2950_v41, %v1510_v30 }
 0x381   : > { %1551 = vrot.lane.b32.xlu0 %v1538_v35, %s3200_s17  ;;  %v1514_v42 = vsel %vm1513_vm13, %v1510_v30, %v1512_v52  ;;  %v627_v52 = vld [vmem:[%s4041_s5] sm:$0x1] }
 0x382   : > { %v1517_v58 = vsel %vm1515_vm14, %v1516_v57, %v1514_v42 }
 0x383   : > { %1549 = vrot.lane.b32.xlu1 %v1537_v37, %s3200_s17 }
 0x387   : > { %1553 = vrot.lane.b32.xlu1 %v1539_v48, %s3200_s17 }
 0x3f7   : > { %v1137_v32 = vpop.xlane.xlu1 %1136 }
 0x3f8   : > { %v1146_v27 = vpop.xlane.xlu0 %1145  ;;  %v1147_v37 = vsub.f32 %v3645_v22, %v1137_v32 }
 0x3f9   : > { %v1150_v33 = vsub.f32 %v2681_v23, %v1146_v27 }
 0x3fa   : > { %v1151_v54 = vmul.f32 1.442695, %v1147_v37 }
 0x3fb   : > { %v1157_v34 = vmul.f32 1.442695, %v1150_v33  ;;  %v1140_v35 = vpop.xlane.xlu1 %1139 }
 0x3fc   : > { %v1148_v59 = vsub.f32 %v3649_v25, %v1140_v35  ;;  %v1552_v35 = vpop.permute.xlu0 %1551 }
 0x3fd   : > { %2951 = vpow2.f32 %v1157_v34 }
 0x3fe   : > { %v1153_v56 = vmul.f32 1.442695, %v1148_v59 }
 0x3ff   : > { %v1143_v28 = vpop.xlane.xlu1 %1142 }
 0x400   : > { %v1149_v48 = vsub.f32 %v3643_v21, %v1143_v28  ;;  %v1518_v21 = vmax.f32 %v1517_v58, 1e-12 }
 0x402   : > { %v1155_v55 = vmul.f32 1.442695, %v1149_v48 }
 0x403   : > { %v1550_v34 = vpop.permute.xlu1 %1549 }
 0x404   : > { %2953 = vpow2.f32 %v1155_v55 }
 0x405   : > { %2955 = vpow2.f32 %v1151_v54 }
 0x406   : > { %2957 = vpow2.f32 %v1153_v56 }
 0x407   : > { %v3688_v23 = vpop.eup %2951  ;;  %2959 = vrcp.f32 %v1518_v21  ;;  %v1554_v37 = vpop.permute.xlu1 %1553 }
 0x408   : > { %v1168_v22 = vsel %vm637_vm1, %v3688_v23, 0.0 }
 0x409   : > { %1169 = vadd.xlane.f32.xlu0 %v1168_v22 }
 0x40e   : > { %v2954_v61 = vpop.eup %2953 }
 0x40f   : > { %v1165_v25 = vsel %vm637_vm1, %v2954_v61, 0.0  ;;  %v2956_v43 = vpop.eup %2955 }
 0x410   : > { %1166 = vadd.xlane.f32.xlu1 %v1165_v25  ;;  %v1159_v62 = vsel %vm637_vm1, %v2956_v43, 0.0  ;;  %v2958_v63 = vpop.eup %2957 }
 0x411   : > { %v1162_v2 = vsel %vm637_vm1, %v2958_v63, 0.0  ;;  %v2960_v3 = vpop.eup %2959 }
 0x412   : > { %v1529_v4 = vmul.f32 %v2960_v3, %v3457_v47  ;;  %v1530_v5 = vmul.f32 %v2960_v3, %v3467_v53  ;;  %v1533_v19 = vmul.f32 %v2960_v3, %v3529_v8  ;;  %v1534_v50 = vmul.f32 %v2960_v3, %v3535_v10 }
 0x413   : > { %v1531_v29 = vmul.f32 %v2960_v3, %v3489_v14  ;;  %v1532_v30 = vmul.f32 %v2960_v3, %v3501_v20  ;;  %v1535_v32 = vmul.f32 %v2960_v3, %v3541_v17  ;;  %v1536_v27 = vmul.f32 %v2960_v3, %v3566_v46 }
 0x414   : > { %1160 = vadd.xlane.f32.xlu1 %v1159_v62  ;;  %v1541_v6 = vpack.c.bf16 %v1530_v5, %v1529_v4  ;;  %v1543_v26 = vpack.c.bf16 %v1534_v50, %v1533_v19 }
 0x415   : > { %v1542_v31 = vpack.c.bf16 %v1532_v30, %v1531_v29  ;;  %v1544_v33 = vpack.c.bf16 %v1536_v27, %v1535_v32 }
 0x418   : > { %1163 = vadd.xlane.f32.xlu1 %v1162_v2 }
 0x41f   : > { %1189 = vrot.lane.b32.xlu0 %v3677_v1, %s3199_s16 }
 0x423   : > { %1581 = vrot.lane.b32.xlu0 %v1541_v6, %s3200_s17 }
 0x427   : > { %1193 = vrot.lane.b32.xlu0 %v3681_v40, %s3199_s16 }
 0x429   : > { %1555 = vrot.lane.b32.xlu1 %v1540_v24, %s3200_s17 }
 0x42b   : > { %1585 = vrot.lane.b32.xlu0 %v1543_v26, %s3200_s17 }
 0x42d   : > { %1191 = vrot.lane.b32.xlu1 %v3675_v0, %s3199_s16 }
 0x431   : > { %1583 = vrot.lane.b32.xlu1 %v1542_v31, %s3200_s17 }
 0x435   : > { %1195 = vrot.lane.b32.xlu1 %v3679_v18, %s3199_s16  ;;  %s3202_s16 = smov [#allocation8]  }
 0x439   : > { %1587 = vrot.lane.b32.xlu1 %v1544_v33, %s3200_s17 }
 0x449   : > { %1561 = vxpose.xlu0.c.b16.start [1/4] (short) (narrow) %v1550_v34, 32 }
 0x44d   : > { %1562 = vxpose.xlu0.c.b16.cont [2/4] (short) (narrow) %v1552_v35, 32 }
 0x451   : > { %1563 = vxpose.xlu0.c.b16.cont [3/4] (short) (narrow) %v1554_v37, 32 }
 0x496   : > { %v1170_v41 = vpop.xlane.xlu0 %1169 }
 0x49a   : > { %v1190_v28 = vpop.permute.xlu0 %1189 }
 0x49b   : > { %2686 = vmatprep.mubr.msk.bf16.mxu0 %vm637_vm1, %v1190_v28 }
 0x49d   : > { %v1167_v48 = vpop.xlane.xlu1 %1166 }
 0x49e   : > { %2961 = vrcp.f32 %v1167_v48 }
 0x4a1   : > { %v1161_v54 = vpop.xlane.xlu1 %1160 }
 0x4a2   : > { %2963 = vrcp.f32 %v1161_v54 }
 0x4a3   : > { %2965 = vrcp.f32 %v627_v52  ;;  %v1904_v52 = vrot.slane %v3597_v51, 4 }
 0x4a4   : > { %2967 = vrcp.f32 %v1170_v41 }
 0x4a5   : > { %v1164_v59 = vpop.xlane.xlu1 %1163  ;;  %v1905_v54 = vadd.f32 %v1904_v52, %v3597_v51 }
 0x4a6   : > { %2969 = vrcp.f32 %v1164_v59 }
 0x4a7   : > { %v1906_v59 = vrot.slane %v1905_v54, 2 }
 0x4a8   : > { %v2962_v42 = vpop.eup %2961 }
 0x4a9   : > { %v1556_v55 = vpop.permute.xlu1 %1555  ;;  %v1177_v21 = vmul.f32 %v2962_v42, %v2954_v61  ;;  %v1907_v42 = vadd.f32 %v1906_v59, %v1905_v54 }
 0x4aa   : > { %1564 = vxpose.xlu0.c.b16.end [4/4] (short) (narrow) %v1556_v55, 32  ;;  %v1933_v55 = vrot.slane %v3605_v60, 4 }
 0x4ac   : > { %v2964_v56 = vpop.eup %2963 }
 0x4ad   : > { %v2966_v57 = vpop.eup %2965  ;;  %v1175_v58 = vmul.f32 %v2964_v56, %v2956_v43  ;;  %v1192_v19 = vpop.permute.xlu1 %1191  ;;  %v1934_v56 = vadd.f32 %v1933_v55, %v3605_v60 }
 0x4ae   : > { %v2968_v22 = vpop.eup %2967  ;;  %v3726_v62 = vrot.slane %v2966_v57, %v348_v39  ;;  %v1582_v43 = vpop.permute.xlu0 %1581  ;;  %v1908_v57 = vrot.slane %v1907_v42, 1 }
 0x4af   : > { %v1178_v3 = vmul.f32 %v2968_v22, %v3688_v23  ;;  %v1935_v22 = vrot.slane %v1934_v56, 2 }
 0x4b0   : > { %v2970_v25 = vpop.eup %2969  ;;  %v1179_v4 = vmul.f32 %v1175_v58, %v3726_v62  ;;  %v1181_v6 = vmul.f32 %v1177_v21, %v3726_v62  ;;  %v1909_v58 = vadd.f32 %v1908_v57, %v1907_v42 }
 0x4b1   : > { %v1176_v2 = vmul.f32 %v2970_v25, %v2958_v63  ;;  %v1182_v12 = vmul.f32 %v1178_v3, %v3726_v62  ;;  %v1584_v38 = vpop.permute.xlu1 %1583  ;;  %v1936_v21 = vadd.f32 %v1935_v22, %v1934_v56 }
 0x4b2   : > { %v1194_v39 = vpop.permute.xlu0 %1193  ;;  %2971 = vrsqrt.f32 %v1909_v58  ;;  %vm1912_vm15 = vcmp.eq.f32.partialorder %v1909_v58, inf  ;;  %v1915_v51 = vand.u32 2147483648, %v1909_v58  ;;  %vm1914_vm0 = vcmp.eq.f32.partialorder %v1909_v58, 0.0 }
 0x4b3   : > { %v1180_v5 = vmul.f32 %v1176_v2, %v3726_v62  ;;  %v1184_v61 = vpack.c.bf16 %v1182_v12, %v1181_v6  ;;  %v1937_v25 = vrot.slane %v1936_v21, 1 }
 0x4b5   : > { %v1183_v11 = vpack.c.bf16 %v1180_v5, %v1179_v4  ;;  %v1196_v23 = vpop.permute.xlu1 %1195  ;;  %v1938_v2 = vadd.f32 %v1937_v25, %v1936_v21 }
 0x4b6   : > { %v1586_v63 = vpop.permute.xlu0 %1585 }
 0x4b7   : > { %2682 = vmatprep.subr.bf16.mxu0 %v1183_v11  ;;  %2973 = vrsqrt.f32 %v1938_v2  ;;  %vm1941_vm2 = vcmp.eq.f32.partialorder %v1938_v2, inf  ;;  %vm1943_vm3 = vcmp.eq.f32.partialorder %v1938_v2, 0.0 }
 0x4b8   : > { %2683 = vmatpush3.bf16.msra.mxu0 %v1183_v11 }
 0x4b9   : > { %2684 = vmatprep.subr.bf16.mxu0 %v1184_v61  ;;  %v1588_v50 = vpop.permute.xlu1 %1587 }
 0x4bc   : > { %2685 = vmatpush3.bf16.msra.mxu0 %v1184_v61  ;;  %v2972_v3 = vpop.eup %2971 }
 0x4bd   : > { %2718 = vmatprep.subr.bf16.mxu0 %v1582_v43  ;;  %v1911_v4 = vmul.f32 %v2972_v3, %v1909_v58 }
 0x4bf   : > { %2687 = vmatmul.mubr.msk.bf16.vlgmr.msra.gmra.mrb[20].mxu0 %vm637_vm1, %v1192_v19  ;;  %v1913_v5 = vsel %vm1912_vm15, %v1909_v58, %v1911_v4 }
 0x4c0   : > { %2719 = vmatpush3.bf16.msra.mxu0 %v1582_v43  ;;  %2690 = vmatprep.mubr.msk.bf16.mxu0 %vm637_vm1, %v1194_v39  ;;  %v1916_v11 = vsel %vm1914_vm0, %v1915_v51, %v1913_v5 }
 0x4c1   : > { %2720 = vmatprep.subr.bf16.mxu0 %v1584_v38  ;;  %v2974_v6 = vpop.eup %2973 }
 0x4c2   : > { %v1940_v19 = vmul.f32 %v2974_v6, %v1938_v2 }
 0x4c4   : > { %2721 = vmatpush3.bf16.msra.mxu0 %v1584_v38  ;;  %v1917_v38 = vmax.f32 %v1916_v11, 1e-12 }
 0x4c5   : > { %2722 = vmatprep.subr.bf16.mxu0 %v1586_v63 }
 0x4c6   : > { %2975 = vrcp.f32 %v1917_v38 }
 0x4c7   : > { %2691 = vmatmul.mubr.msk.bf16.gmra.mrb[24].mxu0 %vm637_vm1, %v1196_v23 }
 0x4c8   : > { %2723 = vmatpush3.bf16.msra.mxu0 %v1586_v63  ;;  %v1942_v63 = vsel %vm1941_vm2, %v1938_v2, %v1940_v19 }
 0x4c9   : > { %2724 = vmatprep.subr.bf16.mxu0 %v1588_v50 }
 0x4cc   : > { %2725 = vmatpush3.bf16.msra.mxu0 %v1588_v50 }
 0x4d0   : > { %v2976_v59 = vpop.eup %2975 }
 0x4d1   : > { %v1950_v55 = vmul.f32 %v2976_v59, %v3486_v13  ;;  %v1951_v42 = vmul.f32 %v2976_v59, %v3492_v15  ;;  %v1948_v56 = vmul.f32 %v2976_v59, %v3454_v45  ;;  %v1949_v57 = vmul.f32 %v2976_v59, %v3460_v49 }
 0x4d2   : > { %v1952_v25 = vmul.f32 %v2976_v59, %v3526_v7  ;;  %v1954_v6 = vmul.f32 %v2976_v59, %v3538_v16  ;;  %v1955_v51 = vmul.f32 %v2976_v59, %v3560_v36 }
 0x4d3   : > { %v1966_v22 = vpack.c.bf16 %v1951_v42, %v1950_v55  ;;  %v1965_v21 = vpack.c.bf16 %v1949_v57, %v1948_v56 }
 0x4d4   : > { %v1968_v19 = vpack.c.bf16 %v1955_v51, %v1954_v6 }
 0x504   : > { %v1569_v24 = vpop.trf.xlu0 }
 0x505   : > { %2726 = vmatprep.mubr.msk.bf16.mxu0 %vm746_vm10, %v1569_v24  ;;  %v1944_v24 = vand.u32 2147483648, %v1938_v2  ;;  %v1953_v2 = vmul.f32 %v2976_v59, %v3532_v9 }
 0x507   : > { %v1967_v5 = vpack.c.bf16 %v1953_v2, %v1952_v25 }
 0x508   : > { %v1570_v26 = vpop.trf.xlu0 }
 0x509   : > { %2727 = vmatmul.mubr.msk.bf16.vlgmr.msra.gmra.mrb[28].mxu0 %vm746_vm10, %v1570_v26  ;;  %v1945_v26 = vsel %vm1943_vm3, %v1944_v24, %v1942_v63 }
 0x50a   : > { %v1946_v54 = vmax.f32 %v1945_v26, 1e-12 }
 0x50c   : > { %2977 = vrcp.f32 %v1946_v54 }
 0x516   : > { %v3774_v58 = vpop.eup %2977 }
 0x517   : > { %v1957_v3 = vmul.f32 %v3774_v58, %v3457_v47  ;;  %v1958_v4 = vmul.f32 %v3774_v58, %v3467_v53  ;;  %v653_v47 = vrot.slane %v3593_v44, 4  ;;  %v1959_v51 = vmul.f32 %v3774_v58, %v3489_v14 }
 0x518   : > { %v1962_v14 = vmul.f32 %v3774_v58, %v3535_v10 }
 0x519   : > { %v1969_v11 = vpack.c.bf16 %v1958_v4, %v1957_v3 }
 0x592   : > { %v3738_v29 = vpop.f32.mrb[20].mxu0 }
 0x593   : > { %v3740_v30 = vpop.f32.mrb[21].mxu0 }
 0x594   : > { %v3742_v31 = vpop.f32.mrb[22].mxu0 }
 0x595   : > { %v1275_v32 = vpack.c.bf16 %v3742_v31, %v3738_v29  ;;  %v3746_v27 = vpop.f32.mrb[23].mxu0 }
 0x596   : > { %v1274_v33 = vpack.c.bf16 %v3746_v27, %v3740_v30 }
 0x59a   : > { %v3750_v34 = vpop.f32.mrb[24].mxu0 }
 0x59b   : > { %v3752_v35 = vpop.f32.mrb[25].mxu0 }
 0x59c   : > { %v3754_v37 = vpop.f32.mrb[26].mxu0 }
 0x59d   : > { %v1277_v41 = vpack.c.bf16 %v3754_v37, %v3750_v34  ;;  %v3758_v28 = vpop.f32.mrb[27].mxu0 }
 0x59e   : > { %v1276_v48 = vpack.c.bf16 %v3758_v28, %v3752_v35 }
 0x5dc   : > { %v2728_v12 = vpop.f32.mrb[28].mxu0 }
 0x5dd   : > { %v1633_v61 = vpop.f32.mrb[29].mxu0  ;;  %v1654_v60 = vsel %vm637_vm1, %v2728_v12, -inf }
 0x5de   : > { %1655 = vmax.xlane.f32.xlu1 %v1654_v60  ;;  %v2729_v43 = vpop.f32.mrb[30].mxu0  ;;  %v1648_v50 = vsel %vm637_vm1, %v1633_v61, -inf }
 0x5df   : > { %v1636_v39 = vpop.f32.mrb[31].mxu0  ;;  %v1657_v23 = vsel %vm637_vm1, %v2729_v43, -inf }
 0x5e0   : > { %1658 = vmax.xlane.f32.xlu0 %v1657_v23  ;;  %v1651_v52 = vsel %vm637_vm1, %v1636_v39, -inf }
 0x5e2   : > { %1649 = vmax.xlane.f32.xlu1 %v1648_v50  ;;  %v654_v50 = vadd.f32 %v653_v47, %v3593_v44 }
 0x5e4   : > { %v655_v55 = vrot.slane %v654_v50, 2 }
 0x5e6   : > { %1652 = vmax.xlane.f32.xlu1 %v1651_v52 }
 0x5f6   : > { %1979 = vrot.lane.b32.xlu0 %v1966_v22, %s3201_s15 }
 0x5f7   : > { %1977 = vrot.lane.b32.xlu1 %v1965_v21, %s3201_s15 }
 0x5fa   : > { %1698 = vrot.lane.b32.xlu0 %v3677_v1, %s3200_s17 }
 0x5fb   : > { %1981 = vrot.lane.b32.xlu1 %v1967_v5, %s3201_s15 }
 0x5fe   : > { %2009 = vrot.lane.b32.xlu0 %v1969_v11, %s3201_s15  ;;  %v1960_v11 = vmul.f32 %v3774_v58, %v3501_v20 }
 0x5ff   : > { %1983 = vrot.lane.b32.xlu1 %v1968_v19, %s3201_s15 }
 0x600   : > { %v1970_v47 = vpack.c.bf16 %v1960_v11, %v1959_v51 }
 0x603   : > { %1700 = vrot.lane.b32.xlu1 %v3675_v0, %s3200_s17 }
 0x66b   : > { %v1656_v53 = vpop.xlane.xlu1 %1655 }
 0x66c   : > { %v1662_v60 = vsub.f32 %v2728_v12, %v1656_v53  ;;  %v656_v12 = vadd.f32 %v655_v55, %v654_v50  ;;  %v1963_v50 = vmul.f32 %v3774_v58, %v3541_v17 }
 0x66d   : > { %v1659_v38 = vpop.xlane.xlu0 %1658 }
 0x66e   : > { %v1668_v23 = vmul.f32 1.442695, %v1662_v60  ;;  %v1663_v63 = vsub.f32 %v2729_v43, %v1659_v38  ;;  %v657_v44 = vrot.slane %v656_v12, 1 }
 0x66f   : > { %v1650_v24 = vpop.xlane.xlu1 %1649 }
 0x670   : > { %2979 = vpow2.f32 %v1668_v23  ;;  %v1670_v26 = vmul.f32 1.442695, %v1663_v63  ;;  %v1660_v52 = vsub.f32 %v1633_v61, %v1650_v24  ;;  %v1961_v63 = vmul.f32 %v3774_v58, %v3529_v8 }
 0x671   : > { %v3795_v54 = vpop.permute.xlu0 %1979  ;;  %v1964_v24 = vmul.f32 %v3774_v58, %v3566_v46 }
 0x672   : > { %2981 = vpow2.f32 %v1670_v26  ;;  %v1664_v59 = vmul.f32 1.442695, %v1660_v52  ;;  %v1971_v20 = vpack.c.bf16 %v1962_v14, %v1961_v63 }
 0x673   : > { %v1653_v42 = vpop.xlane.xlu1 %1652  ;;  %v1972_v26 = vpack.c.bf16 %v1964_v24, %v1963_v50 }
 0x674   : > { %2983 = vpow2.f32 %v1664_v59  ;;  %v1661_v56 = vsub.f32 %v1636_v39, %v1653_v42  ;;  %v658_v39 = vadd.f32 %v657_v44, %v656_v12 }
 0x675   : > { %v1699_v57 = vpop.permute.xlu0 %1698 }
 0x676   : > { %v1666_v22 = vmul.f32 1.442695, %v1661_v56  ;;  %2734 = vmatprep.mubr.msk.bf16.mxu0 %vm637_vm1, %v1699_v57  ;;  %vm661_vm4 = vcmp.eq.f32.partialorder %v658_v39, inf  ;;  %v664_v60 = vand.u32 2147483648, %v658_v39  ;;  %vm663_vm5 = vcmp.eq.f32.partialorder %v658_v39, 0.0 }
 0x678   : > { %2985 = vpow2.f32 %v1666_v22 }
 0x679   : > { %2987 = vrsqrt.f32 %v658_v39  ;;  %v2010_v12 = vpop.permute.xlu0 %2009 }
 0x67a   : > { %v3798_v43 = vpop.eup %2979 }
 0x67b   : > { %v1678_v61 = vsel %vm637_vm1, %v3798_v43, 0.0 }
 0x67c   : > { %v3802_v21 = vpop.eup %2981  ;;  %1679 = vadd.xlane.f32.xlu1 %v1678_v61 }
 0x67d   : > { %v1681_v25 = vsel %vm637_vm1, %v3802_v21, 0.0 }
 0x67e   : > { %v3806_v2 = vpop.eup %2983  ;;  %1682 = vadd.xlane.f32.xlu0 %v1681_v25 }
 0x67f   : > { %v1672_v3 = vsel %vm637_vm1, %v3806_v2, 0.0 }
 0x680   : > { %1673 = vadd.xlane.f32.xlu1 %v1672_v3 }
 0x682   : > { %v3810_v4 = vpop.eup %2985 }
 0x683   : > { %v1675_v5 = vsel %vm637_vm1, %v3810_v4, 0.0  ;;  %v2988_v6 = vpop.eup %2987 }
 0x684   : > { %1676 = vadd.xlane.f32.xlu1 %v1675_v5  ;;  %v660_v19 = vmul.f32 %v2988_v6, %v658_v39 }
 0x686   : > { %v662_v53 = vsel %vm661_vm4, %v658_v39, %v660_v19 }
 0x687   : > { %v665_v38 = vsel %vm663_vm5, %v664_v60, %v662_v53 }
 0x688   : > { %v666_v23 = vmax.f32 %v665_v38, 1e-12 }
 0x68a   : > { %2989 = vrcp.f32 %v666_v23 }
 0x694   : > { %2011 = vrot.lane.b32.xlu0 %v1970_v47, %s3201_s15  ;;  %v2990_v8 = vpop.eup %2989 }
 0x695   : > { %v705_v52 = vmul.f32 %v2990_v8, %v3454_v45  ;;  %v706_v10 = vmul.f32 %v2990_v8, %v3460_v49  ;;  %v707_v55 = vmul.f32 %v2990_v8, %v3486_v13  ;;  %v708_v42 = vmul.f32 %v2990_v8, %v3492_v15  ;;  %v1978_v49 = vpop.permute.xlu1 %1977 }
 0x696   : > { %v709_v56 = vmul.f32 %v2990_v8, %v3526_v7  ;;  %v710_v46 = vmul.f32 %v2990_v8, %v3532_v9  ;;  %v711_v57 = vmul.f32 %v2990_v8, %v3538_v16  ;;  %v712_v22 = vmul.f32 %v2990_v8, %v3560_v36 }
 0x697   : > { %v722_v59 = vpack.c.bf16 %v706_v10, %v705_v52  ;;  %v723_v17 = vpack.c.bf16 %v708_v42, %v707_v55 }
 0x698   : > { %1702 = vrot.lane.b32.xlu0 %v3681_v40, %s3200_s17  ;;  %v724_v58 = vpack.c.bf16 %v710_v46, %v709_v56  ;;  %v725_v45 = vpack.c.bf16 %v712_v22, %v711_v57 }
 0x699   : > { %v1982_v13 = vpop.permute.xlu1 %1981 }
 0x69c   : > { %1704 = vrot.lane.b32.xlu0 %v3679_v18, %s3200_s17  ;;  %s3121_s17 = sshll.u32 %s3202_s16, 4  ;;  %s3122_s17 = int_to_ptr.vmem [resolvable:$false] %s3121_s17 }
 0x69d   : > { %v1984_v15 = vpop.permute.xlu1 %1983  ;;  %s3123_s18 = scalar_lea.vmem %s3122_s17, 2048  ;;  %p3124_p5 = scmp.lt.s32.totalorder %s3987_s9, %s3122_s17 }
 0x69e   : > { %p3125_p9 = scmp.lt.s32.totalorder %s3123_s18, %s3117_s29 }
 0x6a0   : > { %2013 = vrot.lane.b32.xlu0 %v1971_v20, %s3201_s15  ;;  %p3126_p12 = por %p3125_p9, %p3124_p5 }
 0x6a1   : > { %v1701_v7 = vpop.permute.xlu1 %1700 }
 0x6a2   : > { %p3127_p2 = pnand %p3126_p12, %p3120_p3 }
 0x6a4   : > { %2015 = vrot.lane.b32.xlu0 %v1972_v26, %s3201_s15 }
 0x6b1   : > { %730 = vxpose.xlu1.c.b16.start [1/4] (short) (narrow) %v722_v59, 32 }
 0x6b5   : > { %731 = vxpose.xlu1.c.b16.cont [2/4] (short) (narrow) %v723_v17, 32 }
 0x6b9   : > { %732 = vxpose.xlu1.c.b16.cont [3/4] (short) (narrow) %v724_v58, 32 }
 0x6bd   : > { %733 = vxpose.xlu1.c.b16.end [4/4] (short) (narrow) %v725_v45, 32 }
 0x6c2   : > { %1989 = vxpose.xlu0.c.b16.start [1/4] (short) (narrow) %v1978_v49, 32 }
 0x6c6   : > { %1990 = vxpose.xlu0.c.b16.cont [2/4] (short) (narrow) %v3795_v54, 32 }
 0x6ca   : > { %1991 = vxpose.xlu0.c.b16.cont [3/4] (short) (narrow) %v1982_v13, 32 }
 0x6ce   : > { %1992 = vxpose.xlu0.c.b16.end [4/4] (short) (narrow) %v1984_v15, 32 }
 0x709   : > { %v1680_v9 = vpop.xlane.xlu1 %1679 }
 0x70b   : > { %v1683_v44 = vpop.xlane.xlu0 %1682 }
 0x70c   : > { %2991 = vrcp.f32 %v1683_v44 }
 0x70d   : > { %v1674_v61 = vpop.xlane.xlu1 %1673 }
 0x70e   : > { %2993 = vrcp.f32 %v1674_v61 }
 0x70f   : > { %2995 = vrcp.f32 %v1680_v9  ;;  %v2012_v36 = vpop.permute.xlu0 %2011 }
 0x711   : > { %v1677_v16 = vpop.xlane.xlu1 %1676 }
 0x712   : > { %2997 = vrcp.f32 %v1677_v16 }
 0x713   : > { %v1703_v5 = vpop.permute.xlu0 %1702 }
 0x716   : > { %v2992_v25 = vpop.eup %2991 }
 0x717   : > { %v738_v39 = vpop.trf.xlu1  ;;  %v1691_v11 = vmul.f32 %v2992_v25, %v3802_v21  ;;  %v1705_v63 = vpop.permute.xlu0 %1704 }
 0x718   : > { %v2994_v3 = vpop.eup %2993  ;;  %2654 = vmatprep.mubr.msk.bf16.mxu1 %vm746_vm10, %v738_v39 }
 0x719   : > { %v2996_v54 = vpop.eup %2995  ;;  %v1688_v51 = vmul.f32 %v2994_v3, %v3806_v2  ;;  %v1695_v23 = vmul.f32 %v1691_v11, %v3726_v62 }
 0x71a   : > { %v1690_v53 = vmul.f32 %v2996_v54, %v3798_v43 }
 0x71b   : > { %v739_v6 = vpop.trf.xlu1  ;;  %v1692_v60 = vmul.f32 %v1688_v51, %v3726_v62  ;;  %v2014_v20 = vpop.permute.xlu0 %2013 }
 0x71c   : > { %v2998_v19 = vpop.eup %2997  ;;  %2655 = vmatmul.mubr.msk.bf16.vlgmr.msra.gmra.mrb[8].mxu1 %vm746_vm10, %v739_v6  ;;  %v1694_v21 = vmul.f32 %v1690_v53, %v3726_v62 }
 0x71d   : > { %2662 = vmatprep.mubr.msk.bf16.mxu1 %vm637_vm1, %v3677_v1  ;;  %v1689_v47 = vmul.f32 %v2998_v19, %v3810_v4 }
 0x71e   : > { %v1697_v14 = vpack.c.bf16 %v1695_v23, %v1694_v21 }
 0x71f   : > { %v1693_v38 = vmul.f32 %v1689_v47, %v3726_v62  ;;  %v2016_v43 = vpop.permute.xlu0 %2015 }
 0x721   : > { %v1696_v2 = vpack.c.bf16 %v1693_v38, %v1692_v60 }
 0x723   : > { %2730 = vmatprep.subr.bf16.mxu0 %v1696_v2 }
 0x724   : > { %2731 = vmatpush3.bf16.msra.mxu0 %v1696_v2 }
 0x725   : > { %2732 = vmatprep.subr.bf16.mxu0 %v1697_v14 }
 0x728   : > { %2733 = vmatpush3.bf16.msra.mxu0 %v1697_v14  ;;  %v1997_v4 = vpop.trf.xlu0 }
 0x729   : > { %2754 = vmatprep.subr.bf16.mxu0 %v2010_v12 }
 0x72b   : > { %2735 = vmatmul.mubr.msk.bf16.vlgmr.msra.gmra.mrb[32].mxu0 %vm637_vm1, %v1701_v7 }
 0x72c   : > { %2738 = vmatprep.mubr.msk.bf16.mxu0 %vm637_vm1, %v1703_v5  ;;  %2755 = vmatpush3.bf16.msra.mxu0 %v2010_v12  ;;  %v1998_v50 = vpop.trf.xlu0 }
 0x72d   : > { %2756 = vmatprep.subr.bf16.mxu0 %v2012_v36 }
 0x730   : > { %2757 = vmatpush3.bf16.msra.mxu0 %v2012_v36 }
 0x731   : > { %2758 = vmatprep.subr.bf16.mxu0 %v2014_v20 }
 0x733   : > { %2739 = vmatmul.mubr.msk.bf16.gmra.mrb[36].mxu0 %vm637_vm1, %v1705_v63 }
 0x734   : > { %2759 = vmatpush3.bf16.msra.mxu0 %v2014_v20  ;;  %2762 = vmatprep.mubr.msk.bf16.mxu0 %vm746_vm10, %v1997_v4 }
 0x735   : > { %2760 = vmatprep.subr.bf16.mxu0 %v2016_v43 }
 0x738   : > { %2761 = vmatpush3.bf16.msra.mxu0 %v2016_v43 }
 0x73b   : > { %2763 = vmatmul.mubr.msk.bf16.vlgmr.msra.gmra.mrb[40].mxu0 %vm746_vm10, %v1998_v50 }
 0x7ef   : > { %v2656_v24 = vpop.f32.mrb[8].mxu1 }
 0x7f0   : > { %v787_v26 = vpop.f32.mrb[9].mxu1  ;;  %v808_v42 = vsel %vm637_vm1, %v2656_v24, -inf }
 0x7f1   : > { %v2657_v8 = vpop.f32.mrb[10].mxu1  ;;  %v802_v52 = vsel %vm637_vm1, %v787_v26, -inf }
 0x7f2   : > { %803 = vmax.xlane.f32.xlu1 %v802_v52  ;;  %v790_v10 = vpop.f32.mrb[11].mxu1  ;;  %v811_v59 = vsel %vm637_vm1, %v2657_v8, -inf }
 0x7f3   : > { %812 = vmax.xlane.f32.xlu0 %v811_v59  ;;  %v805_v55 = vsel %vm637_vm1, %v790_v10, -inf }
 0x7f6   : > { %806 = vmax.xlane.f32.xlu1 %v805_v55 }
 0x7fa   : > { %809 = vmax.xlane.f32.xlu1 %v808_v42 }
 0x7fe   : > { %v3863_v17 = vpop.f32.mrb[32].mxu0 }
 0x7ff   : > { %v3865_v56 = vpop.f32.mrb[33].mxu0 }
 0x800   : > { %v3867_v46 = vpop.f32.mrb[34].mxu0 }
 0x801   : > { %v1784_v58 = vpack.c.bf16 %v3867_v46, %v3863_v17  ;;  %v3871_v57 = vpop.f32.mrb[35].mxu0 }
 0x802   : > { %v1783_v22 = vpack.c.bf16 %v3871_v57, %v3865_v56 }
 0x806   : > { %v3875_v45 = vpop.f32.mrb[36].mxu0 }
 0x807   : > { %v3877_v49 = vpop.f32.mrb[37].mxu0 }
 0x808   : > { %v3879_v13 = vpop.f32.mrb[38].mxu0 }
 0x809   : > { %v1786_v15 = vpack.c.bf16 %v3879_v13, %v3875_v45  ;;  %v3883_v7 = vpop.f32.mrb[39].mxu0  ;;  %v2530_v45 = vld [vmem:[%s4040_s4] ss:$0 sm:$0xff] }
 0x80a   : > { %v1785_v12 = vpack.c.bf16 %v3883_v7, %v3877_v49 }
 0x80e   : > { %v2764_v9 = vpop.f32.mrb[40].mxu0 }
 0x80f   : > { %v2061_v44 = vpop.f32.mrb[41].mxu0  ;;  %v2082_v3 = vsel %vm637_vm1, %v2764_v9, -inf }
 0x810   : > { %v2765_v61 = vpop.f32.mrb[42].mxu0  ;;  %v2076_v16 = vsel %vm637_vm1, %v2061_v44, -inf }
 0x811   : > { %v2064_v36 = vpop.f32.mrb[43].mxu0  ;;  %2077 = vmax.xlane.f32.xlu1 %v2076_v16  ;;  %v2085_v25 = vsel %vm637_vm1, %v2765_v61, -inf }
 0x812   : > { %2086 = vmax.xlane.f32.xlu0 %v2085_v25  ;;  %v2079_v39 = vsel %vm637_vm1, %v2064_v36, -inf }
 0x815   : > { %2080 = vmax.xlane.f32.xlu1 %v2079_v39 }
 0x819   : > { %2083 = vmax.xlane.f32.xlu1 %v2082_v3 }
 0x87f   : > { %v804_v54 = vpop.xlane.xlu1 %803 }
 0x880   : > { %v814_v5 = vsub.f32 %v787_v26, %v804_v54  ;;  %v813_v6 = vpop.xlane.xlu0 %812 }
 0x881   : > { %v817_v11 = vsub.f32 %v2657_v8, %v813_v6 }
 0x882   : > { %v818_v51 = vmul.f32 1.442695, %v814_v5 }
 0x883   : > { %v807_v19 = vpop.xlane.xlu1 %806  ;;  %v824_v53 = vmul.f32 1.442695, %v817_v11 }
 0x884   : > { %2999 = vpow2.f32 %v818_v51  ;;  %v815_v47 = vsub.f32 %v790_v10, %v807_v19 }
 0x886   : > { %v820_v60 = vmul.f32 1.442695, %v815_v47 }
 0x887   : > { %v810_v38 = vpop.xlane.xlu1 %809 }
 0x888   : > { %3001 = vpow2.f32 %v820_v60  ;;  %v816_v23 = vsub.f32 %v2656_v24, %v810_v38 }
 0x889   : > { %3003 = vpow2.f32 %v824_v53 }
 0x88a   : > { %v822_v63 = vmul.f32 1.442695, %v816_v23 }
 0x88c   : > { %3005 = vpow2.f32 %v822_v63 }
 0x88e   : > { %v3000_v2 = vpop.eup %2999 }
 0x88f   : > { %v826_v21 = vsel %vm637_vm1, %v3000_v2, 0.0 }
 0x890   : > { %827 = vadd.xlane.f32.xlu1 %v826_v21 }
 0x892   : > { %v3002_v14 = vpop.eup %3001 }
 0x893   : > { %v829_v20 = vsel %vm637_vm1, %v3002_v14, 0.0  ;;  %v3004_v43 = vpop.eup %3003 }
 0x894   : > { %830 = vadd.xlane.f32.xlu0 %v829_v20  ;;  %v835_v50 = vsel %vm637_vm1, %v3004_v43, 0.0 }
 0x896   : > { %v3006_v4 = vpop.eup %3005 }
 0x897   : > { %v832_v26 = vsel %vm637_vm1, %v3006_v4, 0.0 }
 0x898   : > { %836 = vadd.xlane.f32.xlu0 %v835_v50  ;;  %833 = vadd.xlane.f32.xlu1 %v832_v26 }
 0x89e   : > { %v2078_v24 = vpop.xlane.xlu1 %2077 }
 0x89f   : > { %v2088_v8 = vsub.f32 %v2061_v44, %v2078_v24  ;;  %v2087_v52 = vpop.xlane.xlu0 %2086 }
 0x8a0   : > { %v2091_v59 = vsub.f32 %v2765_v61, %v2087_v52 }
 0x8a1   : > { %v2092_v10 = vmul.f32 1.442695, %v2088_v8 }
 0x8a2   : > { %v2081_v55 = vpop.xlane.xlu1 %2080  ;;  %v2098_v16 = vmul.f32 1.442695, %v2091_v59 }
 0x8a3   : > { %3007 = vpow2.f32 %v2092_v10  ;;  %v2089_v42 = vsub.f32 %v2064_v36, %v2081_v55 }
 0x8a5   : > { %v2094_v25 = vmul.f32 1.442695, %v2089_v42  ;;  %v2925_v42 = vld [vmem:[#allocation7 + $0x10] sm:$0xff]  }
 0x8a6   : > { %v2084_v39 = vpop.xlane.xlu1 %2083 }
 0x8a7   : > { %3009 = vpow2.f32 %v2094_v25  ;;  %v2090_v3 = vsub.f32 %v2764_v9, %v2084_v39 }
 0x8a8   : > { %3011 = vpow2.f32 %v2098_v16 }
 0x8a9   : > { %v2096_v54 = vmul.f32 1.442695, %v2090_v3  ;;  %v2928_v3 = vld [vmem:[#allocation7 + $0x8] sm:$0xff]  }
 0x8ab   : > { %3013 = vpow2.f32 %v2096_v54 }
 0x8ad   : > { %v3895_v5 = vpop.eup %3007 }
 0x8ae   : > { %v2100_v6 = vsel %vm637_vm1, %v3895_v5, 0.0 }
 0x8af   : > { %2101 = vadd.xlane.f32.xlu1 %v2100_v6 }
 0x8b1   : > { %v3899_v44 = vpop.eup %3009 }
 0x8b2   : > { %v2103_v61 = vsel %vm637_vm1, %v3899_v44, 0.0  ;;  %v3903_v36 = vpop.eup %3011 }
 0x8b3   : > { %2104 = vadd.xlane.f32.xlu0 %v2103_v61  ;;  %v2109_v9 = vsel %vm637_vm1, %v3903_v36, 0.0 }
 0x8b5   : > { %v3905_v51 = vpop.eup %3013 }
 0x8b6   : > { %v2106_v11 = vsel %vm637_vm1, %v3905_v51, 0.0 }
 0x8b7   : > { %2110 = vadd.xlane.f32.xlu0 %v2109_v9  ;;  %2107 = vadd.xlane.f32.xlu1 %v2106_v11  ;;  %v2930_v11 = vld [vmem:[#allocation7 + $0x28] sm:$0xff]  }
 0x8c8   : > { %2126 = vrot.lane.b32.xlu1 %v3677_v1, %s3201_s15 }
 0x8cc   : > { %2130 = vrot.lane.b32.xlu1 %v3681_v40, %s3201_s15 }
 0x8cd   : > { %2128 = vrot.lane.b32.xlu0 %v3675_v0, %s3201_s15 }
 0x8d0   : > { %2132 = vrot.lane.b32.xlu1 %v3679_v18, %s3201_s15 }
 0x91d   : > { %v828_v19 = vpop.xlane.xlu1 %827 }
 0x91e   : > { %3015 = vrcp.f32 %v828_v19 }
 0x921   : > { %v831_v47 = vpop.xlane.xlu0 %830 }
 0x922   : > { %3017 = vrcp.f32 %v831_v47 }
 0x925   : > { %v837_v53 = vpop.xlane.xlu0 %836  ;;  %v834_v60 = vpop.xlane.xlu1 %833 }
 0x926   : > { %3019 = vrcp.f32 %v837_v53  ;;  %v2931_v53 = vld [vmem:[#allocation7 + $0x30] sm:$0xff]  }
 0x927   : > { %3021 = vrcp.f32 %v834_v60 }
 0x928   : > { %v3016_v38 = vpop.eup %3015 }
 0x929   : > { %v842_v23 = vmul.f32 %v3016_v38, %v3000_v2  ;;  %v2926_v2 = vld [vmem:[#allocation7 + $0x18] sm:$0xff]  }
 0x92b   : > { %v852_v21 = vmul.f32 %v3726_v62, %v842_v23 }
 0x92c   : > { %v3018_v1 = vpop.eup %3017 }
 0x92d   : > { %v843_v63 = vmul.f32 %v3018_v1, %v3002_v14 }
 0x92f   : > { %v853_v20 = vmul.f32 %v3726_v62, %v843_v63  ;;  %v2932_v63 = vld [vmem:[#allocation7 + $0x38] sm:$0xff]  }
 0x930   : > { %v3020_v50 = vpop.eup %3019 }
 0x931   : > { %v3022_v26 = vpop.eup %3021  ;;  %v860_v24 = vpack.c.bf16 %v853_v20, %v852_v21  ;;  %v845_v8 = vmul.f32 %v3020_v50, %v3004_v43  ;;  %v2927_v43 = vld [vmem:[#allocation7] sm:$0xff]  }
 0x932   : > { %v844_v52 = vmul.f32 %v3022_v26, %v3006_v4 }
 0x933   : > { %2658 = vmatprep.subr.bf16.mxu1 %v860_v24  ;;  %v855_v10 = vmul.f32 %v3726_v62, %v845_v8 }
 0x934   : > { %2659 = vmatpush3.bf16.msra.mxu1 %v860_v24  ;;  %v854_v59 = vmul.f32 %v3726_v62, %v844_v52 }
 0x936   : > { %v861_v55 = vpack.c.bf16 %v855_v10, %v854_v59 }
 0x938   : > { %2660 = vmatprep.subr.bf16.mxu1 %v861_v55 }
 0x939   : > { %2661 = vmatpush3.bf16.msra.mxu1 %v861_v55 }
 0x93a   : > { %2694 = vmatprep.subr.bf16.mxu1 %v2925_v42 }
 0x93c   : > { %2663 = vmatmul.mubr.msk.bf16.vlgmr.msra.gmra.mrb[12].mxu1 %vm637_vm1, %v3675_v0  ;;  %v2102_v14 = vpop.xlane.xlu1 %2101 }
 0x93d   : > { %2666 = vmatprep.mubr.msk.bf16.mxu1 %vm637_vm1, %v3681_v40  ;;  %3023 = vrcp.f32 %v2102_v14  ;;  %2695 = vmatpush3.bf16.msra.mxu1 %v2925_v42 }
 0x93e   : > { %2696 = vmatprep.subr.bf16.mxu1 %v2926_v2 }
 0x940   : > { %v2105_v4 = vpop.xlane.xlu0 %2104 }
 0x941   : > { %3025 = vrcp.f32 %v2105_v4  ;;  %2697 = vmatpush3.bf16.msra.mxu1 %v2926_v2 }
 0x942   : > { %2706 = vmatprep.subr.bf16.mxu1 %v2927_v43 }
 0x944   : > { %2667 = vmatmul.mubr.msk.bf16.gmra.mrb[16].mxu1 %vm637_vm1, %v3679_v18  ;;  %v2111_v16 = vpop.xlane.xlu0 %2110  ;;  %v2108_v25 = vpop.xlane.xlu1 %2107 }
 0x945   : > { %3027 = vrcp.f32 %v2111_v16  ;;  %2698 = vmatprep.mubr.msk.bf16.mxu1 %vm637_vm1, %v1274_v33 }
 0x946   : > { %3029 = vrcp.f32 %v2108_v25 }
 0x947   : > { %v3024_v0 = vpop.eup %3023 }
 0x948   : > { %v2127_v40 = vpop.permute.xlu1 %2126  ;;  %v2116_v39 = vmul.f32 %v3024_v0, %v3895_v5 }
 0x949   : > { %2770 = vmatprep.mubr.msk.bf16.mxu0 %vm637_vm1, %v2127_v40 }
 0x94a   : > { %v2120_v30 = vmul.f32 %v2116_v39, %v3726_v62 }
 0x94b   : > { %v3026_v54 = vpop.eup %3025 }
 0x94c   : > { %2699 = vmatmul.mubr.msk.bf16.vlgmr.msra.gmra.mrb[20].mxu1 %vm637_vm1, %v1275_v32  ;;  %v2117_v18 = vmul.f32 %v3026_v54, %v3899_v44  ;;  %v2131_v44 = vpop.permute.xlu1 %2130 }
 0x94d   : > { %2702 = vmatprep.mubr.msk.bf16.mxu1 %vm637_vm1, %v1276_v48  ;;  %2707 = vmatpush3.bf16.msra.mxu1 %v2927_v43  ;;  %v2129_v48 = vpop.permute.xlu0 %2128 }
 0x94e   : > { %v2121_v27 = vmul.f32 %v2117_v18, %v3726_v62  ;;  %2708 = vmatprep.subr.bf16.mxu1 %v2928_v3 }
 0x94f   : > { %v3028_v33 = vpop.eup %3027 }
 0x950   : > { %v3030_v5 = vpop.eup %3029  ;;  %v2124_v6 = vpack.c.bf16 %v2121_v27, %v2120_v30  ;;  %v2119_v29 = vmul.f32 %v3028_v33, %v3903_v36  ;;  %v2133_v61 = vpop.permute.xlu1 %2132  ;;  %v2929_v36 = vld [vmem:[#allocation7 + $0x20] sm:$0xff]  }
 0x951   : > { %v2118_v31 = vmul.f32 %v3030_v5, %v3905_v51  ;;  %2709 = vmatpush3.bf16.msra.mxu1 %v2928_v3 }
 0x952   : > { %2766 = vmatprep.subr.bf16.mxu0 %v2124_v6  ;;  %v2123_v32 = vmul.f32 %v2119_v29, %v3726_v62  ;;  %2742 = vmatprep.subr.bf16.mxu1 %v2929_v36 }
 0x953   : > { %2767 = vmatpush3.bf16.msra.mxu0 %v2124_v6  ;;  %v2122_v35 = vmul.f32 %v2118_v31, %v3726_v62 }
 0x954   : > { %2703 = vmatmul.mubr.msk.bf16.gmra.mrb[24].mxu1 %vm637_vm1, %v1277_v41 }
 0x955   : > { %v2125_v28 = vpack.c.bf16 %v2123_v32, %v2122_v35 }
 0x957   : > { %2768 = vmatprep.subr.bf16.mxu0 %v2125_v28 }
 0x958   : > { %2769 = vmatpush3.bf16.msra.mxu0 %v2125_v28 }
 0x95b   : > { %2771 = vmatmul.mubr.msk.bf16.vlgmr.msra.gmra.mrb[44].mxu0 %vm637_vm1, %v2129_v48 }
 0x95c   : > { %2774 = vmatprep.mubr.msk.bf16.mxu0 %vm637_vm1, %v2131_v44 }
 0x963   : > { %2775 = vmatmul.mubr.msk.bf16.gmra.mrb[48].mxu0 %vm637_vm1, %v2133_v61 }
 0xa0f   : > { %v2664_v62 = vpop.f32.mrb[12].mxu1 }
 0xa10   : > { %v908_v51 = vpop.f32.mrb[13].mxu1 }
 0xa11   : > { %v2665_v9 = vpop.f32.mrb[14].mxu1 }
 0xa12   : > { %v940_v34 = vpack.c.bf16 %v2665_v9, %v2664_v62  ;;  %v911_v37 = vpop.f32.mrb[15].mxu1 }
 0xa13   : > { %v939_v41 = vpack.c.bf16 %v911_v37, %v908_v51 }
 0xa15   : > { %2710 = vmatprep.mubr.msk.bf16.mxu1 %vm637_vm1, %v939_v41 }
 0xa16   : > { %2711 = vmatmul.mubr.msk.bf16.vlgmr.msra.gmra.mrb[20].mxu1 %vm637_vm1, %v940_v34 }
 0xa17   : > { %v2668_v19 = vpop.f32.mrb[16].mxu1  ;;  %2743 = vmatpush3.bf16.msra.mxu1 %v2929_v36 }
 0xa18   : > { %v924_v47 = vpop.f32.mrb[17].mxu1  ;;  %2744 = vmatprep.subr.bf16.mxu1 %v2930_v11 }
 0xa19   : > { %v2669_v60 = vpop.f32.mrb[18].mxu1 }
 0xa1a   : > { %v942_v38 = vpack.c.bf16 %v2669_v60, %v2668_v19  ;;  %v927_v23 = vpop.f32.mrb[19].mxu1 }
 0xa1b   : > { %v941_v1 = vpack.c.bf16 %v927_v23, %v924_v47  ;;  %2745 = vmatpush3.bf16.msra.mxu1 %v2930_v11 }
 0xa1c   : > { %2778 = vmatprep.subr.bf16.mxu1 %v2931_v53 }
 0xa1d   : > { %2714 = vmatprep.mubr.msk.bf16.mxu1 %vm637_vm1, %v941_v1 }
 0xa1e   : > { %2715 = vmatmul.mubr.msk.bf16.gmra.mrb[24].mxu1 %vm637_vm1, %v942_v38 }
 0xa1f   : > { %2746 = vmatprep.mubr.msk.bf16.mxu1 %vm637_vm1, %v1783_v22 }
 0xa26   : > { %2747 = vmatmul.mubr.msk.bf16.vlgmr.msra.gmra.mrb[20].mxu1 %vm637_vm1, %v1784_v58 }
 0xa27   : > { %2750 = vmatprep.mubr.msk.bf16.mxu1 %vm637_vm1, %v1785_v12  ;;  %2779 = vmatpush3.bf16.msra.mxu1 %v2931_v53 }
 0xa28   : > { %2780 = vmatprep.subr.bf16.mxu1 %v2932_v63 }
 0xa2b   : > { %2781 = vmatpush3.bf16.msra.mxu1 %v2932_v63 }
 0xa2e   : > { %2751 = vmatmul.mubr.msk.bf16.gmra.mrb[24].mxu1 %vm637_vm1, %v1786_v15  ;;  %v2772_v56 = vpop.f32.mrb[44].mxu0 }
 0xa2f   : > { %v2180_v57 = vpop.f32.mrb[45].mxu0 }
 0xa30   : > { %v2773_v22 = vpop.f32.mrb[46].mxu0 }
 0xa31   : > { %v2212_v21 = vpack.c.bf16 %v2773_v22, %v2772_v56  ;;  %v2183_v17 = vpop.f32.mrb[47].mxu0 }
 0xa32   : > { %v2211_v46 = vpack.c.bf16 %v2183_v17, %v2180_v57 }
 0xa34   : > { %2782 = vmatprep.mubr.msk.bf16.mxu1 %vm637_vm1, %v2211_v46 }
 0xa36   : > { %v2776_v58 = vpop.f32.mrb[48].mxu0  ;;  %2783 = vmatmul.mubr.msk.bf16.vlgmr.msra.gmra.mrb[20].mxu1 %vm637_vm1, %v2212_v21 }
 0xa37   : > { %v2196_v49 = vpop.f32.mrb[49].mxu0 }
 0xa38   : > { %v2777_v7 = vpop.f32.mrb[50].mxu0 }
 0xa39   : > { %v2214_v12 = vpack.c.bf16 %v2777_v7, %v2776_v58  ;;  %v2199_v20 = vpop.f32.mrb[51].mxu0 }
 0xa3a   : > { %v2213_v50 = vpack.c.bf16 %v2199_v20, %v2196_v49 }
 0xa3c   : > { %2786 = vmatprep.mubr.msk.bf16.mxu1 %vm637_vm1, %v2213_v50 }
 0xa3e   : > { %2787 = vmatmul.mubr.msk.bf16.gmra.mrb[24].mxu1 %vm637_vm1, %v2214_v12 }
 0xb09   : > { %v2784_v13 = vpop.f32.mrb[20].mxu1 }
 0xb0a   : > { %v2325_v15 = vadd.f32 %v2784_v13, %v2530_v45  ;;  %v2277_v26 = vpop.f32.mrb[21].mxu1 }
 0xb0b   : > { %v2323_v24 = vadd.f32 %v2530_v45, %v2277_v26  ;;  %v2785_v8 = vpop.f32.mrb[22].mxu1 }
 0xb0c   : > { %2333 = vst [vmem:[%s298_s20 + $0x10] sm:$0xff] %v2325_v15  ;;  %v2326_v52 = vadd.f32 %v2785_v8, %v2530_v45  ;;  %v2280_v10 = vpop.f32.mrb[23].mxu1 }
 0xb0d   : > { %2331 = vst [vmem:[%s298_s20] sm:$0xff] %v2323_v24  ;;  %v2324_v59 = vadd.f32 %v2530_v45, %v2280_v10 }
 0xb0e   : > { %2334 = vst [vmem:[%s298_s20 + $0x18] sm:$0xff] %v2326_v52 }
 0xb0f   : > { %2332 = vst [vmem:[%s298_s20 + $0x8] sm:$0xff] %v2324_v59 }
 0xb11   : > { %v2788_v55 = vpop.f32.mrb[24].mxu1 }
 0xb12   : > { %v2329_v42 = vadd.f32 %v2788_v55, %v2530_v45  ;;  %v2293_v2 = vpop.f32.mrb[25].mxu1 }
 0xb13   : > { %v2327_v14 = vadd.f32 %v2530_v45, %v2293_v2  ;;  %v2789_v43 = vpop.f32.mrb[26].mxu1 }
 0xb14   : > { %2337 = vst [vmem:[%s298_s20 + $0x30] sm:$0xff] %v2329_v42  ;;  %v2330_v4 = vadd.f32 %v2789_v43, %v2530_v45  ;;  %v2296_v16 = vpop.f32.mrb[27].mxu1 }
 0xb15   : > { %2335 = vst [vmem:[%s298_s20 + $0x20] sm:$0xff] %v2327_v14  ;;  %v2328_v25 = vadd.f32 %v2530_v45, %v2296_v16 }
 0xb16   : > { %2338 = vst [vmem:[%s298_s20 + $0x38] sm:$0xff] %v2330_v4 }
 0xb17   : > { %2336 = vst [vmem:[%s298_s20 + $0x28] sm:$0xff] %v2328_v25 }
 0xb18   : > { %3130 = shalt.err (!%p3127_p2)
}
 0xb19   : > { %s3131_s19 = scalar_lea.hbm %s3992_s27, 1024  ;;  %s3135_s30 = scalar_lea.hbm %s4042_s6, 2048 }
 0xb1a   : > { %p3132_p13 = scmp.ne.s32.totalorder %s3992_s27, %s3131_s19  ;;  %p3136_p4 = scmp.lt.u32.totalorder %s3992_s27, %s4042_s6 }
 0xb1b   : > { %p3137_p7 = scmp.lt.u32.totalorder %s3135_s30, %s3131_s19  ;;  %p3139_p11 = scmp.lt.u32.totalorder %s3131_s19, %s3992_s27 }
 0xb1c   : > { %p3133_p6 = pnand %p3132_p13, %p4056_p0 }
 0xb1d   : > { %p3138_p8 = por %p3137_p7, %p3136_p4 }
 0xb1e   : > { %p3134_p10 = pneg %p3133_p6 }
 0xb1f   : > { %p3140_p1 = por %p3139_p11, %p3138_p8 }
 0xb21   : > { %p3141_p3 = pnand %p3140_p1, %p3134_p10 }
 0xb23   : > { %3144 = shalt.err (!%p3141_p3)
}
 0xb24   : > { %s3203_s10 = smov 128   ;;  %s3204_s8 = smov 8  }
 0xb25   : > { %2824 = dma.vmem_to_hbm [thread:$0]  (%p4056_p0), %s3987_s9, 1024, %s3992_s27, %s2340_s25, %s3203_s10, %s3203_s10, %s3204_s8  }
 0xb26 PF: > { %s2368_s29 = sand.u32 1, %s3175_s21   ;;  %p4057_p5 = scmp.ne.s32.totalorder %s4047_s28, 0 }
 0xb27   : > { %p4058_p9 = scmp.ge.s32.totalorder %s3187_s24, 2  ;;  %s2369_s16 = scalar_lea.sflag [#allocation4], %s2368_s29 }
 0xb29   : > { %p2838_p12 = pnand %p4058_p9, %p4057_p5 }
 0xb2b   : > { %3170 = dma.done.wait (!%p2838_p12), %s2369_s16, 1024  }
 0xb2c   : > { %3172 = vsyncadd (!%p2838_p12), %s2369_s16, 4294966272  ;;  %p20_p2 = scmp.ge.s32.totalorder %s3350_s26, 4   ;;  %s4059_s21 = smov %s3179_s22 }
 0xb2d   : > { %s4060_s22 = smov %s3183_s23  ;;  %s4061_s23 = smov %s3359_s11 }
 0xb2e   : > { %s4062_s24 = smov %s3350_s26  ;;  %22 = sbr.rel (!%p20_p2) target bundleno = 6 (0x6), region = 97 }
 0xb35   :  { %2374 = vsyncpa [#allocation3], 1 }
 0xb36   :  { %2376 = vsyncpa [#allocation3 + $0x1], 1 }
 0xb37   :  { %2377 = vsyncpa [#allocation6], 1 }
 0xb38   :  { %2378 = vsyncpa [#allocation4], 1 }
 0xb39   :  { %2380 = vsyncpa [#allocation4 + $0x1], 1 }

</bundles_post_ra>
